<compile_context>
chip_gen: v7x
topology: tpu7x:2x2x1
jax: 0.10.0
libtpu: 0.0.40
codegen_flags: <defaults>
</compile_context>

<pallas_src>
import functools

import numpy as np
import jax
import jax.numpy as jnp
from jax.experimental import pallas as pl
from jax.experimental.pallas import tpu as pltpu


# ----------------------------------------------------------------------------
# Fused kernel: BiLSTM -> hidden2tag -> Viterbi decode (score, path, feats)
# ----------------------------------------------------------------------------
def bilstm_crf_kernel(xp_ref, wx_ref, wh_ref, b_ref, h0_ref, c0_ref,
                      wtagf_ref, wtagb_ref, btag_ref, transT_ref,
                      score_ref, path_ref, feats_ref,
                      xg_ref, hf_ref, hb_ref, bp_ref,
                      *, Hh, start_idx, stop_idx):
    T2, _ = xp_ref.shape
    T = T2 // 2
    K = transT_ref.shape[0]
    G = 4 * Hh                       # per-direction gate width (i,f,g,o)

    # ---------------- BiLSTM ----------------
    # Hoisted input projection: every timestep, both directions, one MXU matmul.
    # xp rows alternate [x_t (fwd); x_{T-1-t} (bwd)]; wx = [wih_f.T | wih_b.T] (E, 2G).
    xg_ref[...] = (jnp.dot(xp_ref[...], wx_ref[...],
                           preferred_element_type=jnp.float32) + b_ref[...])

    wh = wh_ref[...]                                          # (Hh, 2G) = [whh_f.T | whh_b.T]
    row_is_fwd = jax.lax.broadcasted_iota(jnp.int32, (2, 1), 0) == 0

    def lstm_step(i, carry):
        h, c = carry                                          # (2, Hh) each
        # single recurrence matmul per step (128-lane wide)
        g_all = (xg_ref[pl.ds(2 * i, 2), :]
                 + jnp.dot(h, wh, preferred_element_type=jnp.float32))   # (2, 2G)
        # row 0 keeps the forward gate block, row 1 the backward gate block
        gates = jnp.where(row_is_fwd, g_all[:, :G], g_all[:, G:])        # (2, G)
        i_g = jax.nn.sigmoid(gates[:, 0 * Hh:1 * Hh])
        f_g = jax.nn.sigmoid(gates[:, 1 * Hh:2 * Hh])
        g_g = jnp.tanh(gates[:, 2 * Hh:3 * Hh])
        o_g = jax.nn.sigmoid(gates[:, 3 * Hh:4 * Hh])
        c_new = f_g * c + i_g * g_g
        h_new = o_g * jnp.tanh(c_new)
        hf_ref[pl.ds(i, 1), :] = h_new[0:1, :]                # fwd output at t = i
        hb_ref[pl.ds(T - 1 - i, 1), :] = h_new[1:2, :]        # bwd output at t = T-1-i
        return (h_new, c_new)

    jax.lax.fori_loop(0, T, lstm_step, (h0_ref[...], c0_ref[...]), unroll=True)

    # hidden2tag without a lane-concat: split matmul over fwd/bwd halves.
    feats_ref[...] = (jnp.dot(hf_ref[...], wtagf_ref[...],
                              preferred_element_type=jnp.float32)
                      + jnp.dot(hb_ref[...], wtagb_ref[...],
                                preferred_element_type=jnp.float32)
                      + btag_ref[...])

    # ---------------- Viterbi decode ----------------
    transT = transT_ref[...]                                  # (K, K): transT[prev, next]
    iota_prev = jax.lax.broadcasted_iota(jnp.int32, (K, K), 0)
    iota_col = jax.lax.broadcasted_iota(jnp.int32, (K, 1), 0)
    lane_1k = jax.lax.broadcasted_iota(jnp.int32, (1, K), 1)

    fv0 = jnp.where(iota_col == start_idx, 0.0, -10000.0).astype(jnp.float32)  # (K, 1)

    def vit_step(t, fv_col):
        ntv = fv_col + transT                                 # (K, K)[prev, next]
        m = jnp.max(ntv, axis=0, keepdims=True)               # (1, K) lane-dense
        # first argmax over prev (matches torch/np argmax tie-break), lane-dense
        bp = jnp.min(jnp.where(ntv == m, iota_prev, K), axis=0, keepdims=True)
        bp_ref[pl.ds(t, 1), :] = bp.astype(jnp.int32)
        fv_row = m + feats_ref[pl.ds(t, 1), :]                # (1, K)
        return fv_row.reshape(K, 1)                           # single relayout per step

    fv_col = jax.lax.fori_loop(0, T, vit_step, fv0, unroll=True)

    terminal = fv_col + transT[:, stop_idx:stop_idx + 1]      # (K, 1): fv[prev] + trans[stop, prev]
    tmax = jnp.max(terminal, axis=0, keepdims=True)           # (1, 1)
    score_ref[...] = tmax
    best0 = jnp.min(jnp.where(terminal == tmax, iota_col, K)).astype(jnp.int32)

    # backtrace: path[t] = current tag; move to backpointer
    def bt_step(i, best):
        t = T - 1 - i
        path_ref[t] = best
        row = bp_ref[pl.ds(t, 1), :]                          # (1, K) int32
        return jnp.min(jnp.where(lane_1k == best, row, K))    # row[best]

    jax.lax.fori_loop(0, T, bt_step, best0, unroll=True)


# ----------------------------------------------------------------------------
# Wrapper = BiLSTM_CRF.forward(sentence)
# ----------------------------------------------------------------------------
def bilstm_crf_forward(sentence, p, start_idx, stop_idx):
    embeds = jnp.take(p["emb"], sentence, axis=0)             # (T, E)
    T, E = embeds.shape
    Hh = p["h0"].shape[-1]
    K = p["trans"].shape[0]

    # glue: pack both directions' inputs / weights once, outside the kernel.
    xp = jnp.stack([embeds, embeds[::-1]], axis=1).reshape(2 * T, E)     # (2T, E)
    wx = jnp.concatenate([p["wih_f"].T, p["wih_b"].T], axis=1)           # (E, 8*Hh)
    wh = jnp.concatenate([p["whh_f"].T, p["whh_b"].T], axis=1)           # (Hh, 8*Hh)
    b = jnp.concatenate([p["bih_f"] + p["bhh_f"],
                         p["bih_b"] + p["bhh_b"]]).reshape(1, -1)        # (1, 8*Hh)
    h0 = p["h0"][:, 0, :]                                                # (2, Hh)
    c0 = p["c0"][:, 0, :]                                                # (2, Hh)
    wtagT = p["wtag"].T                                                  # (H, K)
    wtag_f, wtag_b = wtagT[:Hh, :], wtagT[Hh:, :]
    btag = p["btag"].reshape(1, -1)                                      # (1, K)
    transT = p["trans"].T                                                # (K, K)[prev, next]

    vmem = pl.BlockSpec(memory_space=pltpu.MemorySpace.VMEM)
    smem = pl.BlockSpec(memory_space=pltpu.MemorySpace.SMEM)

    score, path, feats = pl.pallas_call(
        functools.partial(bilstm_crf_kernel, Hh=Hh,
                          start_idx=start_idx, stop_idx=stop_idx),
        out_shape=(jax.ShapeDtypeStruct((1, 1), jnp.float32),            # path score
                   jax.ShapeDtypeStruct((T,), jnp.int32),                # best path
                   jax.ShapeDtypeStruct((T, K), jnp.float32)),           # lstm feats
        in_specs=[vmem] * 10,
        out_specs=(vmem, smem, vmem),
        scratch_shapes=[pltpu.VMEM((2 * T, 8 * Hh), jnp.float32),        # hoisted x-proj
                        pltpu.VMEM((T, Hh), jnp.float32),                # hf
                        pltpu.VMEM((T, Hh), jnp.float32),                # hb
                        pltpu.VMEM((T, K), jnp.int32)],                  # backpointers
    )(xp, wx, wh, b, h0, c0, wtag_f, wtag_b, btag, transT)
    return score[0, 0], path, feats


# ----------------------------------------------------------------------------
# Pure numpy reference (mirrors the PyTorch semantics) for verification
# ----------------------------------------------------------------------------
def _sig(x):
    return 1.0 / (1.0 + np.exp(-x))


def reference_forward(sentence, p, start_idx, stop_idx):
    pnp = {k: np.asarray(v, np.float32) if v.dtype != jnp.int32 else np.asarray(v)
           for k, v in p.items()}
    emb = pnp["emb"][np.asarray(sentence)]
    T = emb.shape[0]
    Hh = pnp["h0"].shape[-1]

    def run_dir(order, wih, whh, bih, bhh, h, c):
        outs = [None] * T
        for t in order:
            g = wih @ emb[t] + bih + whh @ h + bhh
            i_g = _sig(g[0:Hh]); f_g = _sig(g[Hh:2 * Hh])
            g_g = np.tanh(g[2 * Hh:3 * Hh]); o_g = _sig(g[3 * Hh:4 * Hh])
            c = f_g * c + i_g * g_g
            h = o_g * np.tanh(c)
            outs[t] = h
        return np.stack(outs)

    hf = run_dir(range(T), pnp["wih_f"], pnp["whh_f"], pnp["bih_f"], pnp["bhh_f"],
                 pnp["h0"][0, 0], pnp["c0"][0, 0])
    hb = run_dir(range(T - 1, -1, -1), pnp["wih_b"], pnp["whh_b"], pnp["bih_b"],
                 pnp["bhh_b"], pnp["h0"][1, 0], pnp["c0"][1, 0])
    lstm_out = np.concatenate([hf, hb], axis=1)
    feats = lstm_out @ pnp["wtag"].T + pnp["btag"]

    trans = pnp["trans"]
    K = trans.shape[0]
    fv = np.full((K,), -10000.0, np.float32)
    fv[start_idx] = 0.0
    bps = []
    for t in range(T):
        ntv = fv[None, :] + trans
        best = np.argmax(ntv, axis=1)
        bps.append(best)
        fv = ntv[np.arange(K), best] + feats[t]
    terminal = fv + trans[stop_idx]
    best_tag = int(np.argmax(terminal))
    score = terminal[best_tag]
    path = []
    cur = best_tag
    for t in range(T - 1, -1, -1):
        path.append(cur)
        cur = int(bps[t][cur])
    assert cur == start_idx
    path.reverse()
    return np.float32(score), path, feats


# ----------------------------------------------------------------------------
if __name__ == "__main__":
    V, E, H, K, T = 20, 16, 32, 7, 8
    Hh = H // 2
    START_IDX, STOP_IDX = K - 2, K - 1

    keys = jax.random.split(jax.random.PRNGKey(0), 16)
    s = 0.3
    trans = jax.random.normal(keys[10], (K, K), jnp.float32)
    trans = trans.at[START_IDX, :].set(-10000.0)
    trans = trans.at[:, STOP_IDX].set(-10000.0)

    params = {
        "emb":   jax.random.normal(keys[0], (V, E), jnp.float32),
        "wih_f": jax.random.normal(keys[1], (4 * Hh, E), jnp.float32) * s,
        "whh_f": jax.random.normal(keys[2], (4 * Hh, Hh), jnp.float32) * s,
        "bih_f": jax.random.normal(keys[3], (4 * Hh,), jnp.float32) * s,
        "bhh_f": jax.random.normal(keys[4], (4 * Hh,), jnp.float32) * s,
        "wih_b": jax.random.normal(keys[5], (4 * Hh, E), jnp.float32) * s,
        "whh_b": jax.random.normal(keys[6], (4 * Hh, Hh), jnp.float32) * s,
        "bih_b": jax.random.normal(keys[7], (4 * Hh,), jnp.float32) * s,
        "bhh_b": jax.random.normal(keys[8], (4 * Hh,), jnp.float32) * s,
        "wtag":  jax.random.normal(keys[9], (K, H), jnp.float32) * s,
        "btag":  jax.random.normal(keys[11], (K,), jnp.float32) * s,
        "trans": trans,
        # deterministic stand-in for init_hidden()'s torch.randn
        "h0":    jax.random.normal(keys[12], (2, 1, Hh), jnp.float32),
        "c0":    jax.random.normal(keys[13], (2, 1, Hh), jnp.float32),
    }
    sentence = jax.random.randint(keys[14], (T,), 0, V, dtype=jnp.int32)

    score, path, feats = bilstm_crf_forward(sentence, params, START_IDX, STOP_IDX)
    score = jax.block_until_ready(score)
    path = jax.block_until_ready(path)
    feats = jax.block_until_ready(feats)

    ref_score, ref_path, ref_feats = reference_forward(sentence, params,
                                                       START_IDX, STOP_IDX)

    assert np.allclose(np.asarray(feats), ref_feats, rtol=1e-4, atol=1e-4), "feats mismatch"
    assert np.allclose(float(score), float(ref_score), rtol=1e-4, atol=1e-3), "score mismatch"
    assert list(np.asarray(path)) == ref_path, "path mismatch"

    print("KERNEL_OK")
</pallas_src>

<mosaic_0001>
module attributes {stable_mosaic.version = 11 : i64} {
  func.func @bilstm_crf_kernel(%arg0: memref<16x16xf32, #tpu.memory_space<vmem>>, %arg1: memref<16x128xf32, #tpu.memory_space<vmem>>, %arg2: memref<16x128xf32, #tpu.memory_space<vmem>>, %arg3: memref<1x128xf32, #tpu.memory_space<vmem>>, %arg4: memref<2x16xf32, #tpu.memory_space<vmem>>, %arg5: memref<2x16xf32, #tpu.memory_space<vmem>>, %arg6: memref<16x7xf32, #tpu.memory_space<vmem>>, %arg7: memref<16x7xf32, #tpu.memory_space<vmem>>, %arg8: memref<1x7xf32, #tpu.memory_space<vmem>>, %arg9: memref<7x7xf32, #tpu.memory_space<vmem>>, %arg10: memref<1x1xf32, #tpu.memory_space<vmem>>, %arg11: memref<8xi32, #tpu.memory_space<smem>>, %arg12: memref<8x7xf32, #tpu.memory_space<vmem>>, %arg13: memref<16x128xf32, #tpu.memory_space<vmem>>, %arg14: memref<8x16xf32, #tpu.memory_space<vmem>>, %arg15: memref<8x16xf32, #tpu.memory_space<vmem>>, %arg16: memref<8x7xi32, #tpu.memory_space<vmem>>) attributes {dimension_semantics = [], scalar_prefetch = 0 : i64, scratch_operands = 4 : i64, tpu.core_type = #tpu.core_type<tc>} {
    %c0 = arith.constant 0 : index
    %c0_0 = arith.constant 0 : index
    %0 = vector.load %arg0[%c0, %c0_0] : memref<16x16xf32, #tpu.memory_space<vmem>>, vector<16x16xf32>
    %c0_1 = arith.constant 0 : index
    %c0_2 = arith.constant 0 : index
    %1 = vector.load %arg1[%c0_1, %c0_2] : memref<16x128xf32, #tpu.memory_space<vmem>>, vector<16x128xf32>
    %cst = arith.constant dense<0.000000e+00> : vector<16x128xf32>
    %2 = tpu.matmul %0, %1, %cst {dimension_numbers = #tpu.dot_dimension_numbers<[1], [0], [0], [1], [0, 0, 1, 1], [], []>} : vector<16x16xf32>, vector<16x128xf32>, vector<16x128xf32> -> vector<16x128xf32>
    %c0_3 = arith.constant 0 : index
    %c0_4 = arith.constant 0 : index
    %3 = vector.load %arg3[%c0_3, %c0_4] : memref<1x128xf32, #tpu.memory_space<vmem>>, vector<1x128xf32>
    %4 = vector.broadcast %3 : vector<1x128xf32> to vector<16x128xf32>
    %5 = arith.addf %2, %4 : vector<16x128xf32>
    %c0_5 = arith.constant 0 : index
    %c0_6 = arith.constant 0 : index
    %6 = vector.load %arg13[%c0_5, %c0_6] : memref<16x128xf32, #tpu.memory_space<vmem>>, vector<16x128xf32>
    tpu.vector_store %arg13[%c0_5, %c0_6], %5 {strides = array<i32>} : memref<16x128xf32, #tpu.memory_space<vmem>>, vector<16x128xf32>,
    %c0_7 = arith.constant 0 : index
    %c0_8 = arith.constant 0 : index
    %7 = vector.load %arg2[%c0_7, %c0_8] : memref<16x128xf32, #tpu.memory_space<vmem>>, vector<16x128xf32>
    %8 = tpu.iota {dimensions = array<i32: 0>} : vector<2x1xi32>
    %c0_i32 = arith.constant 0 : i32
    %9 = vector.broadcast %c0_i32 : i32 to vector<2x1xi32>
    %10 = arith.cmpi eq, %8, %9 : vector<2x1xi32>
    %c0_9 = arith.constant 0 : index
    %c0_10 = arith.constant 0 : index
    %11 = vector.load %arg4[%c0_9, %c0_10] : memref<2x16xf32, #tpu.memory_space<vmem>>, vector<2x16xf32>
    %c0_11 = arith.constant 0 : index
    %c0_12 = arith.constant 0 : index
    %12 = vector.load %arg5[%c0_11, %c0_12] : memref<2x16xf32, #tpu.memory_space<vmem>>, vector<2x16xf32>
    %c0_i32_13 = arith.constant 0 : i32
    %c2_i32 = arith.constant 2 : i32
    %13 = arith.muli %c2_i32, %c0_i32_13 : i32
    %14 = arith.index_cast %13 : i32 to index
    %c0_14 = arith.constant 0 : index
    %15 = vector.load %arg13[%14, %c0_14] : memref<16x128xf32, #tpu.memory_space<vmem>>, vector<2x128xf32>
    %cst_15 = arith.constant dense<0.000000e+00> : vector<2x128xf32>
    %16 = tpu.matmul %11, %7, %cst_15 {dimension_numbers = #tpu.dot_dimension_numbers<[1], [0], [0], [1], [0, 0, 1, 1], [], []>} : vector<2x16xf32>, vector<16x128xf32>, vector<2x128xf32> -> vector<2x128xf32>
    %17 = arith.addf %15, %16 : vector<2x128xf32>
    %18 = vector.extract_strided_slice %17 {offsets = [0, 0], sizes = [2, 64], strides = [1, 1]} : vector<2x128xf32> to vector<2x64xf32>
    %19 = vector.extract_strided_slice %17 {offsets = [0, 64], sizes = [2, 64], strides = [1, 1]} : vector<2x128xf32> to vector<2x64xf32>
    %20 = vector.shape_cast %10 : vector<2x1xi1> to vector<2x1xi1>
    %21 = vector.broadcast %20 : vector<2x1xi1> to vector<2x64xi1>
    %22 = arith.select %21, %18, %19 : vector<2x64xi1>, vector<2x64xf32>
    %23 = vector.extract_strided_slice %22 {offsets = [0, 0], sizes = [2, 16], strides = [1, 1]} : vector<2x64xf32> to vector<2x16xf32>
    %24 = arith.negf %23 : vector<2x16xf32>
    %25 = math.exp %24 : vector<2x16xf32>
    %cst_16 = arith.constant 1.000000e+00 : f32
    %26 = vector.broadcast %cst_16 : f32 to vector<2x16xf32>
    %27 = arith.addf %26, %25 : vector<2x16xf32>
    %28 = arith.divf %26, %27 : vector<2x16xf32>
    %29 = vector.extract_strided_slice %22 {offsets = [0, 16], sizes = [2, 16], strides = [1, 1]} : vector<2x64xf32> to vector<2x16xf32>
    %30 = arith.negf %29 : vector<2x16xf32>
    %31 = math.exp %30 : vector<2x16xf32>
    %cst_17 = arith.constant 1.000000e+00 : f32
    %32 = vector.broadcast %cst_17 : f32 to vector<2x16xf32>
    %33 = arith.addf %32, %31 : vector<2x16xf32>
    %34 = arith.divf %32, %33 : vector<2x16xf32>
    %35 = vector.extract_strided_slice %22 {offsets = [0, 32], sizes = [2, 16], strides = [1, 1]} : vector<2x64xf32> to vector<2x16xf32>
    %36 = math.tanh %35 : vector<2x16xf32>
    %37 = vector.extract_strided_slice %22 {offsets = [0, 48], sizes = [2, 16], strides = [1, 1]} : vector<2x64xf32> to vector<2x16xf32>
    %38 = arith.negf %37 : vector<2x16xf32>
    %39 = math.exp %38 : vector<2x16xf32>
    %cst_18 = arith.constant 1.000000e+00 : f32
    %40 = vector.broadcast %cst_18 : f32 to vector<2x16xf32>
    %41 = arith.addf %40, %39 : vector<2x16xf32>
    %42 = arith.divf %40, %41 : vector<2x16xf32>
    %43 = arith.mulf %34, %12 : vector<2x16xf32>
    %44 = arith.mulf %28, %36 : vector<2x16xf32>
    %45 = arith.addf %43, %44 : vector<2x16xf32>
    %46 = math.tanh %45 : vector<2x16xf32>
    %47 = arith.mulf %42, %46 : vector<2x16xf32>
    %48 = vector.extract_strided_slice %47 {offsets = [0, 0], sizes = [1, 16], strides = [1, 1]} : vector<2x16xf32> to vector<1x16xf32>
    %49 = arith.index_cast %c0_i32_13 : i32 to index
    %c0_19 = arith.constant 0 : index
    %50 = vector.load %arg14[%49, %c0_19] : memref<8x16xf32, #tpu.memory_space<vmem>>, vector<1x16xf32>
    tpu.vector_store %arg14[%49, %c0_19], %48 {strides = array<i32>} : memref<8x16xf32, #tpu.memory_space<vmem>>, vector<1x16xf32>,
    %51 = vector.extract_strided_slice %47 {offsets = [1, 0], sizes = [1, 16], strides = [1, 1]} : vector<2x16xf32> to vector<1x16xf32>
    %c7_i32 = arith.constant 7 : i32
    %52 = arith.subi %c7_i32, %c0_i32_13 : i32
    %53 = arith.index_cast %52 : i32 to index
    %c0_20 = arith.constant 0 : index
    %54 = vector.load %arg15[%53, %c0_20] : memref<8x16xf32, #tpu.memory_space<vmem>>, vector<1x16xf32>
    tpu.vector_store %arg15[%53, %c0_20], %51 {strides = array<i32>} : memref<8x16xf32, #tpu.memory_space<vmem>>, vector<1x16xf32>,
    %c1_i32 = arith.constant 1 : i32
    %c2_i32_21 = arith.constant 2 : i32
    %55 = arith.muli %c2_i32_21, %c1_i32 : i32
    %56 = arith.index_cast %55 : i32 to index
    %c0_22 = arith.constant 0 : index
    %57 = vector.load %arg13[%56, %c0_22] : memref<16x128xf32, #tpu.memory_space<vmem>>, vector<2x128xf32>
    %cst_23 = arith.constant dense<0.000000e+00> : vector<2x128xf32>
    %58 = tpu.matmul %47, %7, %cst_23 {dimension_numbers = #tpu.dot_dimension_numbers<[1], [0], [0], [1], [0, 0, 1, 1], [], []>} : vector<2x16xf32>, vector<16x128xf32>, vector<2x128xf32> -> vector<2x128xf32>
    %59 = arith.addf %57, %58 : vector<2x128xf32>
    %60 = vector.extract_strided_slice %59 {offsets = [0, 0], sizes = [2, 64], strides = [1, 1]} : vector<2x128xf32> to vector<2x64xf32>
    %61 = vector.extract_strided_slice %59 {offsets = [0, 64], sizes = [2, 64], strides = [1, 1]} : vector<2x128xf32> to vector<2x64xf32>
    %62 = vector.shape_cast %10 : vector<2x1xi1> to vector<2x1xi1>
    %63 = vector.broadcast %62 : vector<2x1xi1> to vector<2x64xi1>
    %64 = arith.select %63, %60, %61 : vector<2x64xi1>, vector<2x64xf32>
    %65 = vector.extract_strided_slice %64 {offsets = [0, 0], sizes = [2, 16], strides = [1, 1]} : vector<2x64xf32> to vector<2x16xf32>
    %66 = arith.negf %65 : vector<2x16xf32>
    %67 = math.exp %66 : vector<2x16xf32>
    %cst_24 = arith.constant 1.000000e+00 : f32
    %68 = vector.broadcast %cst_24 : f32 to vector<2x16xf32>
    %69 = arith.addf %68, %67 : vector<2x16xf32>
    %70 = arith.divf %68, %69 : vector<2x16xf32>
    %71 = vector.extract_strided_slice %64 {offsets = [0, 16], sizes = [2, 16], strides = [1, 1]} : vector<2x64xf32> to vector<2x16xf32>
    %72 = arith.negf %71 : vector<2x16xf32>
    %73 = math.exp %72 : vector<2x16xf32>
    %cst_25 = arith.constant 1.000000e+00 : f32
    %74 = vector.broadcast %cst_25 : f32 to vector<2x16xf32>
    %75 = arith.addf %74, %73 : vector<2x16xf32>
    %76 = arith.divf %74, %75 : vector<2x16xf32>
    %77 = vector.extract_strided_slice %64 {offsets = [0, 32], sizes = [2, 16], strides = [1, 1]} : vector<2x64xf32> to vector<2x16xf32>
    %78 = math.tanh %77 : vector<2x16xf32>
    %79 = vector.extract_strided_slice %64 {offsets = [0, 48], sizes = [2, 16], strides = [1, 1]} : vector<2x64xf32> to vector<2x16xf32>
    %80 = arith.negf %79 : vector<2x16xf32>
    %81 = math.exp %80 : vector<2x16xf32>
    %cst_26 = arith.constant 1.000000e+00 : f32
    %82 = vector.broadcast %cst_26 : f32 to vector<2x16xf32>
    %83 = arith.addf %82, %81 : vector<2x16xf32>
    %84 = arith.divf %82, %83 : vector<2x16xf32>
    %85 = arith.mulf %76, %45 : vector<2x16xf32>
    %86 = arith.mulf %70, %78 : vector<2x16xf32>
    %87 = arith.addf %85, %86 : vector<2x16xf32>
    %88 = math.tanh %87 : vector<2x16xf32>
    %89 = arith.mulf %84, %88 : vector<2x16xf32>
    %90 = vector.extract_strided_slice %89 {offsets = [0, 0], sizes = [1, 16], strides = [1, 1]} : vector<2x16xf32> to vector<1x16xf32>
    %91 = arith.index_cast %c1_i32 : i32 to index
    %c0_27 = arith.constant 0 : index
    %92 = vector.load %arg14[%91, %c0_27] : memref<8x16xf32, #tpu.memory_space<vmem>>, vector<1x16xf32>
    tpu.vector_store %arg14[%91, %c0_27], %90 {strides = array<i32>} : memref<8x16xf32, #tpu.memory_space<vmem>>, vector<1x16xf32>,
    %93 = vector.extract_strided_slice %89 {offsets = [1, 0], sizes = [1, 16], strides = [1, 1]} : vector<2x16xf32> to vector<1x16xf32>
    %c7_i32_28 = arith.constant 7 : i32
    %94 = arith.subi %c7_i32_28, %c1_i32 : i32
    %95 = arith.index_cast %94 : i32 to index
    %c0_29 = arith.constant 0 : index
    %96 = vector.load %arg15[%95, %c0_29] : memref<8x16xf32, #tpu.memory_space<vmem>>, vector<1x16xf32>
    tpu.vector_store %arg15[%95, %c0_29], %93 {strides = array<i32>} : memref<8x16xf32, #tpu.memory_space<vmem>>, vector<1x16xf32>,
    %c2_i32_30 = arith.constant 2 : i32
    %c2_i32_31 = arith.constant 2 : i32
    %97 = arith.muli %c2_i32_31, %c2_i32_30 : i32
    %98 = arith.index_cast %97 : i32 to index
    %c0_32 = arith.constant 0 : index
    %99 = vector.load %arg13[%98, %c0_32] : memref<16x128xf32, #tpu.memory_space<vmem>>, vector<2x128xf32>
    %cst_33 = arith.constant dense<0.000000e+00> : vector<2x128xf32>
    %100 = tpu.matmul %89, %7, %cst_33 {dimension_numbers = #tpu.dot_dimension_numbers<[1], [0], [0], [1], [0, 0, 1, 1], [], []>} : vector<2x16xf32>, vector<16x128xf32>, vector<2x128xf32> -> vector<2x128xf32>
    %101 = arith.addf %99, %100 : vector<2x128xf32>
    %102 = vector.extract_strided_slice %101 {offsets = [0, 0], sizes = [2, 64], strides = [1, 1]} : vector<2x128xf32> to vector<2x64xf32>
    %103 = vector.extract_strided_slice %101 {offsets = [0, 64], sizes = [2, 64], strides = [1, 1]} : vector<2x128xf32> to vector<2x64xf32>
    %104 = vector.shape_cast %10 : vector<2x1xi1> to vector<2x1xi1>
    %105 = vector.broadcast %104 : vector<2x1xi1> to vector<2x64xi1>
    %106 = arith.select %105, %102, %103 : vector<2x64xi1>, vector<2x64xf32>
    %107 = vector.extract_strided_slice %106 {offsets = [0, 0], sizes = [2, 16], strides = [1, 1]} : vector<2x64xf32> to vector<2x16xf32>
    %108 = arith.negf %107 : vector<2x16xf32>
    %109 = math.exp %108 : vector<2x16xf32>
    %cst_34 = arith.constant 1.000000e+00 : f32
    %110 = vector.broadcast %cst_34 : f32 to vector<2x16xf32>
    %111 = arith.addf %110, %109 : vector<2x16xf32>
    %112 = arith.divf %110, %111 : vector<2x16xf32>
    %113 = vector.extract_strided_slice %106 {offsets = [0, 16], sizes = [2, 16], strides = [1, 1]} : vector<2x64xf32> to vector<2x16xf32>
    %114 = arith.negf %113 : vector<2x16xf32>
    %115 = math.exp %114 : vector<2x16xf32>
    %cst_35 = arith.constant 1.000000e+00 : f32
    %116 = vector.broadcast %cst_35 : f32 to vector<2x16xf32>
    %117 = arith.addf %116, %115 : vector<2x16xf32>
    %118 = arith.divf %116, %117 : vector<2x16xf32>
    %119 = vector.extract_strided_slice %106 {offsets = [0, 32], sizes = [2, 16], strides = [1, 1]} : vector<2x64xf32> to vector<2x16xf32>
    %120 = math.tanh %119 : vector<2x16xf32>
    %121 = vector.extract_strided_slice %106 {offsets = [0, 48], sizes = [2, 16], strides = [1, 1]} : vector<2x64xf32> to vector<2x16xf32>
    %122 = arith.negf %121 : vector<2x16xf32>
    %123 = math.exp %122 : vector<2x16xf32>
    %cst_36 = arith.constant 1.000000e+00 : f32
    %124 = vector.broadcast %cst_36 : f32 to vector<2x16xf32>
    %125 = arith.addf %124, %123 : vector<2x16xf32>
    %126 = arith.divf %124, %125 : vector<2x16xf32>
    %127 = arith.mulf %118, %87 : vector<2x16xf32>
    %128 = arith.mulf %112, %120 : vector<2x16xf32>
    %129 = arith.addf %127, %128 : vector<2x16xf32>
    %130 = math.tanh %129 : vector<2x16xf32>
    %131 = arith.mulf %126, %130 : vector<2x16xf32>
    %132 = vector.extract_strided_slice %131 {offsets = [0, 0], sizes = [1, 16], strides = [1, 1]} : vector<2x16xf32> to vector<1x16xf32>
    %133 = arith.index_cast %c2_i32_30 : i32 to index
    %c0_37 = arith.constant 0 : index
    %134 = vector.load %arg14[%133, %c0_37] : memref<8x16xf32, #tpu.memory_space<vmem>>, vector<1x16xf32>
    tpu.vector_store %arg14[%133, %c0_37], %132 {strides = array<i32>} : memref<8x16xf32, #tpu.memory_space<vmem>>, vector<1x16xf32>,
    %135 = vector.extract_strided_slice %131 {offsets = [1, 0], sizes = [1, 16], strides = [1, 1]} : vector<2x16xf32> to vector<1x16xf32>
    %c7_i32_38 = arith.constant 7 : i32
    %136 = arith.subi %c7_i32_38, %c2_i32_30 : i32
    %137 = arith.index_cast %136 : i32 to index
    %c0_39 = arith.constant 0 : index
    %138 = vector.load %arg15[%137, %c0_39] : memref<8x16xf32, #tpu.memory_space<vmem>>, vector<1x16xf32>
    tpu.vector_store %arg15[%137, %c0_39], %135 {strides = array<i32>} : memref<8x16xf32, #tpu.memory_space<vmem>>, vector<1x16xf32>,
    %c3_i32 = arith.constant 3 : i32
    %c2_i32_40 = arith.constant 2 : i32
    %139 = arith.muli %c2_i32_40, %c3_i32 : i32
    %140 = arith.index_cast %139 : i32 to index
    %c0_41 = arith.constant 0 : index
    %141 = vector.load %arg13[%140, %c0_41] : memref<16x128xf32, #tpu.memory_space<vmem>>, vector<2x128xf32>
    %cst_42 = arith.constant dense<0.000000e+00> : vector<2x128xf32>
    %142 = tpu.matmul %131, %7, %cst_42 {dimension_numbers = #tpu.dot_dimension_numbers<[1], [0], [0], [1], [0, 0, 1, 1], [], []>} : vector<2x16xf32>, vector<16x128xf32>, vector<2x128xf32> -> vector<2x128xf32>
    %143 = arith.addf %141, %142 : vector<2x128xf32>
    %144 = vector.extract_strided_slice %143 {offsets = [0, 0], sizes = [2, 64], strides = [1, 1]} : vector<2x128xf32> to vector<2x64xf32>
    %145 = vector.extract_strided_slice %143 {offsets = [0, 64], sizes = [2, 64], strides = [1, 1]} : vector<2x128xf32> to vector<2x64xf32>
    %146 = vector.shape_cast %10 : vector<2x1xi1> to vector<2x1xi1>
    %147 = vector.broadcast %146 : vector<2x1xi1> to vector<2x64xi1>
    %148 = arith.select %147, %144, %145 : vector<2x64xi1>, vector<2x64xf32>
    %149 = vector.extract_strided_slice %148 {offsets = [0, 0], sizes = [2, 16], strides = [1, 1]} : vector<2x64xf32> to vector<2x16xf32>
    %150 = arith.negf %149 : vector<2x16xf32>
    %151 = math.exp %150 : vector<2x16xf32>
    %cst_43 = arith.constant 1.000000e+00 : f32
    %152 = vector.broadcast %cst_43 : f32 to vector<2x16xf32>
    %153 = arith.addf %152, %151 : vector<2x16xf32>
    %154 = arith.divf %152, %153 : vector<2x16xf32>
    %155 = vector.extract_strided_slice %148 {offsets = [0, 16], sizes = [2, 16], strides = [1, 1]} : vector<2x64xf32> to vector<2x16xf32>
    %156 = arith.negf %155 : vector<2x16xf32>
    %157 = math.exp %156 : vector<2x16xf32>
    %cst_44 = arith.constant 1.000000e+00 : f32
    %158 = vector.broadcast %cst_44 : f32 to vector<2x16xf32>
    %159 = arith.addf %158, %157 : vector<2x16xf32>
    %160 = arith.divf %158, %159 : vector<2x16xf32>
    %161 = vector.extract_strided_slice %148 {offsets = [0, 32], sizes = [2, 16], strides = [1, 1]} : vector<2x64xf32> to vector<2x16xf32>
    %162 = math.tanh %161 : vector<2x16xf32>
    %163 = vector.extract_strided_slice %148 {offsets = [0, 48], sizes = [2, 16], strides = [1, 1]} : vector<2x64xf32> to vector<2x16xf32>
    %164 = arith.negf %163 : vector<2x16xf32>
    %165 = math.exp %164 : vector<2x16xf32>
    %cst_45 = arith.constant 1.000000e+00 : f32
    %166 = vector.broadcast %cst_45 : f32 to vector<2x16xf32>
    %167 = arith.addf %166, %165 : vector<2x16xf32>
    %168 = arith.divf %166, %167 : vector<2x16xf32>
    %169 = arith.mulf %160, %129 : vector<2x16xf32>
    %170 = arith.mulf %154, %162 : vector<2x16xf32>
    %171 = arith.addf %169, %170 : vector<2x16xf32>
    %172 = math.tanh %171 : vector<2x16xf32>
    %173 = arith.mulf %168, %172 : vector<2x16xf32>
    %174 = vector.extract_strided_slice %173 {offsets = [0, 0], sizes = [1, 16], strides = [1, 1]} : vector<2x16xf32> to vector<1x16xf32>
    %175 = arith.index_cast %c3_i32 : i32 to index
    %c0_46 = arith.constant 0 : index
    %176 = vector.load %arg14[%175, %c0_46] : memref<8x16xf32, #tpu.memory_space<vmem>>, vector<1x16xf32>
    tpu.vector_store %arg14[%175, %c0_46], %174 {strides = array<i32>} : memref<8x16xf32, #tpu.memory_space<vmem>>, vector<1x16xf32>,
    %177 = vector.extract_strided_slice %173 {offsets = [1, 0], sizes = [1, 16], strides = [1, 1]} : vector<2x16xf32> to vector<1x16xf32>
    %c7_i32_47 = arith.constant 7 : i32
    %178 = arith.subi %c7_i32_47, %c3_i32 : i32
    %179 = arith.index_cast %178 : i32 to index
    %c0_48 = arith.constant 0 : index
    %180 = vector.load %arg15[%179, %c0_48] : memref<8x16xf32, #tpu.memory_space<vmem>>, vector<1x16xf32>
    tpu.vector_store %arg15[%179, %c0_48], %177 {strides = array<i32>} : memref<8x16xf32, #tpu.memory_space<vmem>>, vector<1x16xf32>,
    %c4_i32 = arith.constant 4 : i32
    %c2_i32_49 = arith.constant 2 : i32
    %181 = arith.muli %c2_i32_49, %c4_i32 : i32
    %182 = arith.index_cast %181 : i32 to index
    %c0_50 = arith.constant 0 : index
    %183 = vector.load %arg13[%182, %c0_50] : memref<16x128xf32, #tpu.memory_space<vmem>>, vector<2x128xf32>
    %cst_51 = arith.constant dense<0.000000e+00> : vector<2x128xf32>
    %184 = tpu.matmul %173, %7, %cst_51 {dimension_numbers = #tpu.dot_dimension_numbers<[1], [0], [0], [1], [0, 0, 1, 1], [], []>} : vector<2x16xf32>, vector<16x128xf32>, vector<2x128xf32> -> vector<2x128xf32>
    %185 = arith.addf %183, %184 : vector<2x128xf32>
    %186 = vector.extract_strided_slice %185 {offsets = [0, 0], sizes = [2, 64], strides = [1, 1]} : vector<2x128xf32> to vector<2x64xf32>
    %187 = vector.extract_strided_slice %185 {offsets = [0, 64], sizes = [2, 64], strides = [1, 1]} : vector<2x128xf32> to vector<2x64xf32>
    %188 = vector.shape_cast %10 : vector<2x1xi1> to vector<2x1xi1>
    %189 = vector.broadcast %188 : vector<2x1xi1> to vector<2x64xi1>
    %190 = arith.select %189, %186, %187 : vector<2x64xi1>, vector<2x64xf32>
    %191 = vector.extract_strided_slice %190 {offsets = [0, 0], sizes = [2, 16], strides = [1, 1]} : vector<2x64xf32> to vector<2x16xf32>
    %192 = arith.negf %191 : vector<2x16xf32>
    %193 = math.exp %192 : vector<2x16xf32>
    %cst_52 = arith.constant 1.000000e+00 : f32
    %194 = vector.broadcast %cst_52 : f32 to vector<2x16xf32>
    %195 = arith.addf %194, %193 : vector<2x16xf32>
    %196 = arith.divf %194, %195 : vector<2x16xf32>
    %197 = vector.extract_strided_slice %190 {offsets = [0, 16], sizes = [2, 16], strides = [1, 1]} : vector<2x64xf32> to vector<2x16xf32>
    %198 = arith.negf %197 : vector<2x16xf32>
    %199 = math.exp %198 : vector<2x16xf32>
    %cst_53 = arith.constant 1.000000e+00 : f32
    %200 = vector.broadcast %cst_53 : f32 to vector<2x16xf32>
    %201 = arith.addf %200, %199 : vector<2x16xf32>
    %202 = arith.divf %200, %201 : vector<2x16xf32>
    %203 = vector.extract_strided_slice %190 {offsets = [0, 32], sizes = [2, 16], strides = [1, 1]} : vector<2x64xf32> to vector<2x16xf32>
    %204 = math.tanh %203 : vector<2x16xf32>
    %205 = vector.extract_strided_slice %190 {offsets = [0, 48], sizes = [2, 16], strides = [1, 1]} : vector<2x64xf32> to vector<2x16xf32>
    %206 = arith.negf %205 : vector<2x16xf32>
    %207 = math.exp %206 : vector<2x16xf32>
    %cst_54 = arith.constant 1.000000e+00 : f32
    %208 = vector.broadcast %cst_54 : f32 to vector<2x16xf32>
    %209 = arith.addf %208, %207 : vector<2x16xf32>
    %210 = arith.divf %208, %209 : vector<2x16xf32>
    %211 = arith.mulf %202, %171 : vector<2x16xf32>
    %212 = arith.mulf %196, %204 : vector<2x16xf32>
    %213 = arith.addf %211, %212 : vector<2x16xf32>
    %214 = math.tanh %213 : vector<2x16xf32>
    %215 = arith.mulf %210, %214 : vector<2x16xf32>
    %216 = vector.extract_strided_slice %215 {offsets = [0, 0], sizes = [1, 16], strides = [1, 1]} : vector<2x16xf32> to vector<1x16xf32>
    %217 = arith.index_cast %c4_i32 : i32 to index
    %c0_55 = arith.constant 0 : index
    %218 = vector.load %arg14[%217, %c0_55] : memref<8x16xf32, #tpu.memory_space<vmem>>, vector<1x16xf32>
    tpu.vector_store %arg14[%217, %c0_55], %216 {strides = array<i32>} : memref<8x16xf32, #tpu.memory_space<vmem>>, vector<1x16xf32>,
    %219 = vector.extract_strided_slice %215 {offsets = [1, 0], sizes = [1, 16], strides = [1, 1]} : vector<2x16xf32> to vector<1x16xf32>
    %c7_i32_56 = arith.constant 7 : i32
    %220 = arith.subi %c7_i32_56, %c4_i32 : i32
    %221 = arith.index_cast %220 : i32 to index
    %c0_57 = arith.constant 0 : index
    %222 = vector.load %arg15[%221, %c0_57] : memref<8x16xf32, #tpu.memory_space<vmem>>, vector<1x16xf32>
    tpu.vector_store %arg15[%221, %c0_57], %219 {strides = array<i32>} : memref<8x16xf32, #tpu.memory_space<vmem>>, vector<1x16xf32>,
    %c5_i32 = arith.constant 5 : i32
    %c2_i32_58 = arith.constant 2 : i32
    %223 = arith.muli %c2_i32_58, %c5_i32 : i32
    %224 = arith.index_cast %223 : i32 to index
    %c0_59 = arith.constant 0 : index
    %225 = vector.load %arg13[%224, %c0_59] : memref<16x128xf32, #tpu.memory_space<vmem>>, vector<2x128xf32>
    %cst_60 = arith.constant dense<0.000000e+00> : vector<2x128xf32>
    %226 = tpu.matmul %215, %7, %cst_60 {dimension_numbers = #tpu.dot_dimension_numbers<[1], [0], [0], [1], [0, 0, 1, 1], [], []>} : vector<2x16xf32>, vector<16x128xf32>, vector<2x128xf32> -> vector<2x128xf32>
    %227 = arith.addf %225, %226 : vector<2x128xf32>
    %228 = vector.extract_strided_slice %227 {offsets = [0, 0], sizes = [2, 64], strides = [1, 1]} : vector<2x128xf32> to vector<2x64xf32>
    %229 = vector.extract_strided_slice %227 {offsets = [0, 64], sizes = [2, 64], strides = [1, 1]} : vector<2x128xf32> to vector<2x64xf32>
    %230 = vector.shape_cast %10 : vector<2x1xi1> to vector<2x1xi1>
    %231 = vector.broadcast %230 : vector<2x1xi1> to vector<2x64xi1>
    %232 = arith.select %231, %228, %229 : vector<2x64xi1>, vector<2x64xf32>
    %233 = vector.extract_strided_slice %232 {offsets = [0, 0], sizes = [2, 16], strides = [1, 1]} : vector<2x64xf32> to vector<2x16xf32>
    %234 = arith.negf %233 : vector<2x16xf32>
    %235 = math.exp %234 : vector<2x16xf32>
    %cst_61 = arith.constant 1.000000e+00 : f32
    %236 = vector.broadcast %cst_61 : f32 to vector<2x16xf32>
    %237 = arith.addf %236, %235 : vector<2x16xf32>
    %238 = arith.divf %236, %237 : vector<2x16xf32>
    %239 = vector.extract_strided_slice %232 {offsets = [0, 16], sizes = [2, 16], strides = [1, 1]} : vector<2x64xf32> to vector<2x16xf32>
    %240 = arith.negf %239 : vector<2x16xf32>
    %241 = math.exp %240 : vector<2x16xf32>
    %cst_62 = arith.constant 1.000000e+00 : f32
    %242 = vector.broadcast %cst_62 : f32 to vector<2x16xf32>
    %243 = arith.addf %242, %241 : vector<2x16xf32>
    %244 = arith.divf %242, %243 : vector<2x16xf32>
    %245 = vector.extract_strided_slice %232 {offsets = [0, 32], sizes = [2, 16], strides = [1, 1]} : vector<2x64xf32> to vector<2x16xf32>
    %246 = math.tanh %245 : vector<2x16xf32>
    %247 = vector.extract_strided_slice %232 {offsets = [0, 48], sizes = [2, 16], strides = [1, 1]} : vector<2x64xf32> to vector<2x16xf32>
    %248 = arith.negf %247 : vector<2x16xf32>
    %249 = math.exp %248 : vector<2x16xf32>
    %cst_63 = arith.constant 1.000000e+00 : f32
    %250 = vector.broadcast %cst_63 : f32 to vector<2x16xf32>
    %251 = arith.addf %250, %249 : vector<2x16xf32>
    %252 = arith.divf %250, %251 : vector<2x16xf32>
    %253 = arith.mulf %244, %213 : vector<2x16xf32>
    %254 = arith.mulf %238, %246 : vector<2x16xf32>
    %255 = arith.addf %253, %254 : vector<2x16xf32>
    %256 = math.tanh %255 : vector<2x16xf32>
    %257 = arith.mulf %252, %256 : vector<2x16xf32>
    %258 = vector.extract_strided_slice %257 {offsets = [0, 0], sizes = [1, 16], strides = [1, 1]} : vector<2x16xf32> to vector<1x16xf32>
    %259 = arith.index_cast %c5_i32 : i32 to index
    %c0_64 = arith.constant 0 : index
    %260 = vector.load %arg14[%259, %c0_64] : memref<8x16xf32, #tpu.memory_space<vmem>>, vector<1x16xf32>
    tpu.vector_store %arg14[%259, %c0_64], %258 {strides = array<i32>} : memref<8x16xf32, #tpu.memory_space<vmem>>, vector<1x16xf32>,
    %261 = vector.extract_strided_slice %257 {offsets = [1, 0], sizes = [1, 16], strides = [1, 1]} : vector<2x16xf32> to vector<1x16xf32>
    %c7_i32_65 = arith.constant 7 : i32
    %262 = arith.subi %c7_i32_65, %c5_i32 : i32
    %263 = arith.index_cast %262 : i32 to index
    %c0_66 = arith.constant 0 : index
    %264 = vector.load %arg15[%263, %c0_66] : memref<8x16xf32, #tpu.memory_space<vmem>>, vector<1x16xf32>
    tpu.vector_store %arg15[%263, %c0_66], %261 {strides = array<i32>} : memref<8x16xf32, #tpu.memory_space<vmem>>, vector<1x16xf32>,
    %c6_i32 = arith.constant 6 : i32
    %c2_i32_67 = arith.constant 2 : i32
    %265 = arith.muli %c2_i32_67, %c6_i32 : i32
    %266 = arith.index_cast %265 : i32 to index
    %c0_68 = arith.constant 0 : index
    %267 = vector.load %arg13[%266, %c0_68] : memref<16x128xf32, #tpu.memory_space<vmem>>, vector<2x128xf32>
    %cst_69 = arith.constant dense<0.000000e+00> : vector<2x128xf32>
    %268 = tpu.matmul %257, %7, %cst_69 {dimension_numbers = #tpu.dot_dimension_numbers<[1], [0], [0], [1], [0, 0, 1, 1], [], []>} : vector<2x16xf32>, vector<16x128xf32>, vector<2x128xf32> -> vector<2x128xf32>
    %269 = arith.addf %267, %268 : vector<2x128xf32>
    %270 = vector.extract_strided_slice %269 {offsets = [0, 0], sizes = [2, 64], strides = [1, 1]} : vector<2x128xf32> to vector<2x64xf32>
    %271 = vector.extract_strided_slice %269 {offsets = [0, 64], sizes = [2, 64], strides = [1, 1]} : vector<2x128xf32> to vector<2x64xf32>
    %272 = vector.shape_cast %10 : vector<2x1xi1> to vector<2x1xi1>
    %273 = vector.broadcast %272 : vector<2x1xi1> to vector<2x64xi1>
    %274 = arith.select %273, %270, %271 : vector<2x64xi1>, vector<2x64xf32>
    %275 = vector.extract_strided_slice %274 {offsets = [0, 0], sizes = [2, 16], strides = [1, 1]} : vector<2x64xf32> to vector<2x16xf32>
    %276 = arith.negf %275 : vector<2x16xf32>
    %277 = math.exp %276 : vector<2x16xf32>
    %cst_70 = arith.constant 1.000000e+00 : f32
    %278 = vector.broadcast %cst_70 : f32 to vector<2x16xf32>
    %279 = arith.addf %278, %277 : vector<2x16xf32>
    %280 = arith.divf %278, %279 : vector<2x16xf32>
    %281 = vector.extract_strided_slice %274 {offsets = [0, 16], sizes = [2, 16], strides = [1, 1]} : vector<2x64xf32> to vector<2x16xf32>
    %282 = arith.negf %281 : vector<2x16xf32>
    %283 = math.exp %282 : vector<2x16xf32>
    %cst_71 = arith.constant 1.000000e+00 : f32
    %284 = vector.broadcast %cst_71 : f32 to vector<2x16xf32>
    %285 = arith.addf %284, %283 : vector<2x16xf32>
    %286 = arith.divf %284, %285 : vector<2x16xf32>
    %287 = vector.extract_strided_slice %274 {offsets = [0, 32], sizes = [2, 16], strides = [1, 1]} : vector<2x64xf32> to vector<2x16xf32>
    %288 = math.tanh %287 : vector<2x16xf32>
    %289 = vector.extract_strided_slice %274 {offsets = [0, 48], sizes = [2, 16], strides = [1, 1]} : vector<2x64xf32> to vector<2x16xf32>
    %290 = arith.negf %289 : vector<2x16xf32>
    %291 = math.exp %290 : vector<2x16xf32>
    %cst_72 = arith.constant 1.000000e+00 : f32
    %292 = vector.broadcast %cst_72 : f32 to vector<2x16xf32>
    %293 = arith.addf %292, %291 : vector<2x16xf32>
    %294 = arith.divf %292, %293 : vector<2x16xf32>
    %295 = arith.mulf %286, %255 : vector<2x16xf32>
    %296 = arith.mulf %280, %288 : vector<2x16xf32>
    %297 = arith.addf %295, %296 : vector<2x16xf32>
    %298 = math.tanh %297 : vector<2x16xf32>
    %299 = arith.mulf %294, %298 : vector<2x16xf32>
    %300 = vector.extract_strided_slice %299 {offsets = [0, 0], sizes = [1, 16], strides = [1, 1]} : vector<2x16xf32> to vector<1x16xf32>
    %301 = arith.index_cast %c6_i32 : i32 to index
    %c0_73 = arith.constant 0 : index
    %302 = vector.load %arg14[%301, %c0_73] : memref<8x16xf32, #tpu.memory_space<vmem>>, vector<1x16xf32>
    tpu.vector_store %arg14[%301, %c0_73], %300 {strides = array<i32>} : memref<8x16xf32, #tpu.memory_space<vmem>>, vector<1x16xf32>,
    %303 = vector.extract_strided_slice %299 {offsets = [1, 0], sizes = [1, 16], strides = [1, 1]} : vector<2x16xf32> to vector<1x16xf32>
    %c7_i32_74 = arith.constant 7 : i32
    %304 = arith.subi %c7_i32_74, %c6_i32 : i32
    %305 = arith.index_cast %304 : i32 to index
    %c0_75 = arith.constant 0 : index
    %306 = vector.load %arg15[%305, %c0_75] : memref<8x16xf32, #tpu.memory_space<vmem>>, vector<1x16xf32>
    tpu.vector_store %arg15[%305, %c0_75], %303 {strides = array<i32>} : memref<8x16xf32, #tpu.memory_space<vmem>>, vector<1x16xf32>,
    %c7_i32_76 = arith.constant 7 : i32
    %c2_i32_77 = arith.constant 2 : i32
    %307 = arith.muli %c2_i32_77, %c7_i32_76 : i32
    %308 = arith.index_cast %307 : i32 to index
    %c0_78 = arith.constant 0 : index
    %309 = vector.load %arg13[%308, %c0_78] : memref<16x128xf32, #tpu.memory_space<vmem>>, vector<2x128xf32>
    %cst_79 = arith.constant dense<0.000000e+00> : vector<2x128xf32>
    %310 = tpu.matmul %299, %7, %cst_79 {dimension_numbers = #tpu.dot_dimension_numbers<[1], [0], [0], [1], [0, 0, 1, 1], [], []>} : vector<2x16xf32>, vector<16x128xf32>, vector<2x128xf32> -> vector<2x128xf32>
    %311 = arith.addf %309, %310 : vector<2x128xf32>
    %312 = vector.extract_strided_slice %311 {offsets = [0, 0], sizes = [2, 64], strides = [1, 1]} : vector<2x128xf32> to vector<2x64xf32>
    %313 = vector.extract_strided_slice %311 {offsets = [0, 64], sizes = [2, 64], strides = [1, 1]} : vector<2x128xf32> to vector<2x64xf32>
    %314 = vector.shape_cast %10 : vector<2x1xi1> to vector<2x1xi1>
    %315 = vector.broadcast %314 : vector<2x1xi1> to vector<2x64xi1>
    %316 = arith.select %315, %312, %313 : vector<2x64xi1>, vector<2x64xf32>
    %317 = vector.extract_strided_slice %316 {offsets = [0, 0], sizes = [2, 16], strides = [1, 1]} : vector<2x64xf32> to vector<2x16xf32>
    %318 = arith.negf %317 : vector<2x16xf32>
    %319 = math.exp %318 : vector<2x16xf32>
    %cst_80 = arith.constant 1.000000e+00 : f32
    %320 = vector.broadcast %cst_80 : f32 to vector<2x16xf32>
    %321 = arith.addf %320, %319 : vector<2x16xf32>
    %322 = arith.divf %320, %321 : vector<2x16xf32>
    %323 = vector.extract_strided_slice %316 {offsets = [0, 16], sizes = [2, 16], strides = [1, 1]} : vector<2x64xf32> to vector<2x16xf32>
    %324 = arith.negf %323 : vector<2x16xf32>
    %325 = math.exp %324 : vector<2x16xf32>
    %cst_81 = arith.constant 1.000000e+00 : f32
    %326 = vector.broadcast %cst_81 : f32 to vector<2x16xf32>
    %327 = arith.addf %326, %325 : vector<2x16xf32>
    %328 = arith.divf %326, %327 : vector<2x16xf32>
    %329 = vector.extract_strided_slice %316 {offsets = [0, 32], sizes = [2, 16], strides = [1, 1]} : vector<2x64xf32> to vector<2x16xf32>
    %330 = math.tanh %329 : vector<2x16xf32>
    %331 = vector.extract_strided_slice %316 {offsets = [0, 48], sizes = [2, 16], strides = [1, 1]} : vector<2x64xf32> to vector<2x16xf32>
    %332 = arith.negf %331 : vector<2x16xf32>
    %333 = math.exp %332 : vector<2x16xf32>
    %cst_82 = arith.constant 1.000000e+00 : f32
    %334 = vector.broadcast %cst_82 : f32 to vector<2x16xf32>
    %335 = arith.addf %334, %333 : vector<2x16xf32>
    %336 = arith.divf %334, %335 : vector<2x16xf32>
    %337 = arith.mulf %328, %297 : vector<2x16xf32>
    %338 = arith.mulf %322, %330 : vector<2x16xf32>
    %339 = arith.addf %337, %338 : vector<2x16xf32>
    %340 = math.tanh %339 : vector<2x16xf32>
    %341 = arith.mulf %336, %340 : vector<2x16xf32>
    %342 = vector.extract_strided_slice %341 {offsets = [0, 0], sizes = [1, 16], strides = [1, 1]} : vector<2x16xf32> to vector<1x16xf32>
    %343 = arith.index_cast %c7_i32_76 : i32 to index
    %c0_83 = arith.constant 0 : index
    %344 = vector.load %arg14[%343, %c0_83] : memref<8x16xf32, #tpu.memory_space<vmem>>, vector<1x16xf32>
    tpu.vector_store %arg14[%343, %c0_83], %342 {strides = array<i32>} : memref<8x16xf32, #tpu.memory_space<vmem>>, vector<1x16xf32>,
    %345 = vector.extract_strided_slice %341 {offsets = [1, 0], sizes = [1, 16], strides = [1, 1]} : vector<2x16xf32> to vector<1x16xf32>
    %c7_i32_84 = arith.constant 7 : i32
    %346 = arith.subi %c7_i32_84, %c7_i32_76 : i32
    %347 = arith.index_cast %346 : i32 to index
    %c0_85 = arith.constant 0 : index
    %348 = vector.load %arg15[%347, %c0_85] : memref<8x16xf32, #tpu.memory_space<vmem>>, vector<1x16xf32>
    tpu.vector_store %arg15[%347, %c0_85], %345 {strides = array<i32>} : memref<8x16xf32, #tpu.memory_space<vmem>>, vector<1x16xf32>,
    %c8_i32 = arith.constant 8 : i32
    %c0_86 = arith.constant 0 : index
    %c0_87 = arith.constant 0 : index
    %349 = vector.load %arg14[%c0_86, %c0_87] : memref<8x16xf32, #tpu.memory_space<vmem>>, vector<8x16xf32>
    %c0_88 = arith.constant 0 : index
    %c0_89 = arith.constant 0 : index
    %350 = vector.load %arg6[%c0_88, %c0_89] : memref<16x7xf32, #tpu.memory_space<vmem>>, vector<16x7xf32>
    %cst_90 = arith.constant dense<0.000000e+00> : vector<8x7xf32>
    %351 = tpu.matmul %349, %350, %cst_90 {dimension_numbers = #tpu.dot_dimension_numbers<[1], [0], [0], [1], [0, 0, 1, 1], [], []>} : vector<8x16xf32>, vector<16x7xf32>, vector<8x7xf32> -> vector<8x7xf32>
    %c0_91 = arith.constant 0 : index
    %c0_92 = arith.constant 0 : index
    %352 = vector.load %arg15[%c0_91, %c0_92] : memref<8x16xf32, #tpu.memory_space<vmem>>, vector<8x16xf32>
    %c0_93 = arith.constant 0 : index
    %c0_94 = arith.constant 0 : index
    %353 = vector.load %arg7[%c0_93, %c0_94] : memref<16x7xf32, #tpu.memory_space<vmem>>, vector<16x7xf32>
    %cst_95 = arith.constant dense<0.000000e+00> : vector<8x7xf32>
    %354 = tpu.matmul %352, %353, %cst_95 {dimension_numbers = #tpu.dot_dimension_numbers<[1], [0], [0], [1], [0, 0, 1, 1], [], []>} : vector<8x16xf32>, vector<16x7xf32>, vector<8x7xf32> -> vector<8x7xf32>
    %355 = arith.addf %351, %354 : vector<8x7xf32>
    %c0_96 = arith.constant 0 : index
    %c0_97 = arith.constant 0 : index
    %356 = vector.load %arg8[%c0_96, %c0_97] : memref<1x7xf32, #tpu.memory_space<vmem>>, vector<1x7xf32>
    %357 = vector.broadcast %356 : vector<1x7xf32> to vector<8x7xf32>
    %358 = arith.addf %355, %357 : vector<8x7xf32>
    %c0_98 = arith.constant 0 : index
    %c0_99 = arith.constant 0 : index
    %359 = vector.load %arg12[%c0_98, %c0_99] : memref<8x7xf32, #tpu.memory_space<vmem>>, vector<8x7xf32>
    tpu.vector_store %arg12[%c0_98, %c0_99], %358 {strides = array<i32>} : memref<8x7xf32, #tpu.memory_space<vmem>>, vector<8x7xf32>,
    %c0_100 = arith.constant 0 : index
    %c0_101 = arith.constant 0 : index
    %360 = vector.load %arg9[%c0_100, %c0_101] : memref<7x7xf32, #tpu.memory_space<vmem>>, vector<7x7xf32>
    %361 = tpu.iota {dimensions = array<i32: 0>} : vector<7x7xi32>
    %362 = tpu.iota {dimensions = array<i32: 0>} : vector<7x1xi32>
    %363 = tpu.iota {dimensions = array<i32: 1>} : vector<1x7xi32>
    %c5_i32_102 = arith.constant 5 : i32
    %364 = vector.broadcast %c5_i32_102 : i32 to vector<7x1xi32>
    %365 = arith.cmpi eq, %362, %364 : vector<7x1xi32>
    %cst_103 = arith.constant 0.000000e+00 : f32
    %cst_104 = arith.constant -1.000000e+04 : f32
    %366 = vector.broadcast %cst_103 : f32 to vector<7x1xf32>
    %367 = vector.broadcast %cst_104 : f32 to vector<7x1xf32>
    %368 = arith.select %365, %366, %367 : vector<7x1xi1>, vector<7x1xf32>
    %c0_i32_105 = arith.constant 0 : i32
    %369 = vector.broadcast %368 : vector<7x1xf32> to vector<7x7xf32>
    %370 = arith.addf %369, %360 : vector<7x7xf32>
    %cst_106 = arith.constant dense<0xFF800000> : vector<7xf32>
    %371 = vector.multi_reduction <maximumf>, %370, %cst_106 [0] : vector<7x7xf32> to vector<7xf32>
    %372 = vector.shape_cast %371 : vector<7xf32> to vector<1x7xf32>
    %373 = vector.broadcast %372 : vector<1x7xf32> to vector<7x7xf32>
    %374 = arith.cmpf oeq, %370, %373 : vector<7x7xf32>
    %c7_i32_107 = arith.constant 7 : i32
    %375 = vector.broadcast %c7_i32_107 : i32 to vector<7x7xi32>
    %376 = arith.select %374, %361, %375 : vector<7x7xi1>, vector<7x7xi32>
    %cst_108 = arith.constant dense<2147483647> : vector<7xi32>
    %377 = vector.multi_reduction <minsi>, %376, %cst_108 [0] : vector<7x7xi32> to vector<7xi32>
    %378 = vector.shape_cast %377 : vector<7xi32> to vector<1x7xi32>
    %379 = arith.index_cast %c0_i32_105 : i32 to index
    %c0_109 = arith.constant 0 : index
    %380 = vector.load %arg16[%379, %c0_109] : memref<8x7xi32, #tpu.memory_space<vmem>>, vector<1x7xi32>
    tpu.vector_store %arg16[%379, %c0_109], %378 {strides = array<i32>} : memref<8x7xi32, #tpu.memory_space<vmem>>, vector<1x7xi32>,
    %381 = arith.index_cast %c0_i32_105 : i32 to index
    %c0_110 = arith.constant 0 : index
    %382 = vector.load %arg12[%381, %c0_110] : memref<8x7xf32, #tpu.memory_space<vmem>>, vector<1x7xf32>
    %383 = arith.addf %372, %382 : vector<1x7xf32>
    %384 = vector.shape_cast %383 : vector<1x7xf32> to vector<7x1xf32>
    %c1_i32_111 = arith.constant 1 : i32
    %385 = vector.broadcast %384 : vector<7x1xf32> to vector<7x7xf32>
    %386 = arith.addf %385, %360 : vector<7x7xf32>
    %cst_112 = arith.constant dense<0xFF800000> : vector<7xf32>
    %387 = vector.multi_reduction <maximumf>, %386, %cst_112 [0] : vector<7x7xf32> to vector<7xf32>
    %388 = vector.shape_cast %387 : vector<7xf32> to vector<1x7xf32>
    %389 = vector.broadcast %388 : vector<1x7xf32> to vector<7x7xf32>
    %390 = arith.cmpf oeq, %386, %389 : vector<7x7xf32>
    %c7_i32_113 = arith.constant 7 : i32
    %391 = vector.broadcast %c7_i32_113 : i32 to vector<7x7xi32>
    %392 = arith.select %390, %361, %391 : vector<7x7xi1>, vector<7x7xi32>
    %cst_114 = arith.constant dense<2147483647> : vector<7xi32>
    %393 = vector.multi_reduction <minsi>, %392, %cst_114 [0] : vector<7x7xi32> to vector<7xi32>
    %394 = vector.shape_cast %393 : vector<7xi32> to vector<1x7xi32>
    %395 = arith.index_cast %c1_i32_111 : i32 to index
    %c0_115 = arith.constant 0 : index
    %396 = vector.load %arg16[%395, %c0_115] : memref<8x7xi32, #tpu.memory_space<vmem>>, vector<1x7xi32>
    tpu.vector_store %arg16[%395, %c0_115], %394 {strides = array<i32>} : memref<8x7xi32, #tpu.memory_space<vmem>>, vector<1x7xi32>,
    %397 = arith.index_cast %c1_i32_111 : i32 to index
    %c0_116 = arith.constant 0 : index
    %398 = vector.load %arg12[%397, %c0_116] : memref<8x7xf32, #tpu.memory_space<vmem>>, vector<1x7xf32>
    %399 = arith.addf %388, %398 : vector<1x7xf32>
    %400 = vector.shape_cast %399 : vector<1x7xf32> to vector<7x1xf32>
    %c2_i32_117 = arith.constant 2 : i32
    %401 = vector.broadcast %400 : vector<7x1xf32> to vector<7x7xf32>
    %402 = arith.addf %401, %360 : vector<7x7xf32>
    %cst_118 = arith.constant dense<0xFF800000> : vector<7xf32>
    %403 = vector.multi_reduction <maximumf>, %402, %cst_118 [0] : vector<7x7xf32> to vector<7xf32>
    %404 = vector.shape_cast %403 : vector<7xf32> to vector<1x7xf32>
    %405 = vector.broadcast %404 : vector<1x7xf32> to vector<7x7xf32>
    %406 = arith.cmpf oeq, %402, %405 : vector<7x7xf32>
    %c7_i32_119 = arith.constant 7 : i32
    %407 = vector.broadcast %c7_i32_119 : i32 to vector<7x7xi32>
    %408 = arith.select %406, %361, %407 : vector<7x7xi1>, vector<7x7xi32>
    %cst_120 = arith.constant dense<2147483647> : vector<7xi32>
    %409 = vector.multi_reduction <minsi>, %408, %cst_120 [0] : vector<7x7xi32> to vector<7xi32>
    %410 = vector.shape_cast %409 : vector<7xi32> to vector<1x7xi32>
    %411 = arith.index_cast %c2_i32_117 : i32 to index
    %c0_121 = arith.constant 0 : index
    %412 = vector.load %arg16[%411, %c0_121] : memref<8x7xi32, #tpu.memory_space<vmem>>, vector<1x7xi32>
    tpu.vector_store %arg16[%411, %c0_121], %410 {strides = array<i32>} : memref<8x7xi32, #tpu.memory_space<vmem>>, vector<1x7xi32>,
    %413 = arith.index_cast %c2_i32_117 : i32 to index
    %c0_122 = arith.constant 0 : index
    %414 = vector.load %arg12[%413, %c0_122] : memref<8x7xf32, #tpu.memory_space<vmem>>, vector<1x7xf32>
    %415 = arith.addf %404, %414 : vector<1x7xf32>
    %416 = vector.shape_cast %415 : vector<1x7xf32> to vector<7x1xf32>
    %c3_i32_123 = arith.constant 3 : i32
    %417 = vector.broadcast %416 : vector<7x1xf32> to vector<7x7xf32>
    %418 = arith.addf %417, %360 : vector<7x7xf32>
    %cst_124 = arith.constant dense<0xFF800000> : vector<7xf32>
    %419 = vector.multi_reduction <maximumf>, %418, %cst_124 [0] : vector<7x7xf32> to vector<7xf32>
    %420 = vector.shape_cast %419 : vector<7xf32> to vector<1x7xf32>
    %421 = vector.broadcast %420 : vector<1x7xf32> to vector<7x7xf32>
    %422 = arith.cmpf oeq, %418, %421 : vector<7x7xf32>
    %c7_i32_125 = arith.constant 7 : i32
    %423 = vector.broadcast %c7_i32_125 : i32 to vector<7x7xi32>
    %424 = arith.select %422, %361, %423 : vector<7x7xi1>, vector<7x7xi32>
    %cst_126 = arith.constant dense<2147483647> : vector<7xi32>
    %425 = vector.multi_reduction <minsi>, %424, %cst_126 [0] : vector<7x7xi32> to vector<7xi32>
    %426 = vector.shape_cast %425 : vector<7xi32> to vector<1x7xi32>
    %427 = arith.index_cast %c3_i32_123 : i32 to index
    %c0_127 = arith.constant 0 : index
    %428 = vector.load %arg16[%427, %c0_127] : memref<8x7xi32, #tpu.memory_space<vmem>>, vector<1x7xi32>
    tpu.vector_store %arg16[%427, %c0_127], %426 {strides = array<i32>} : memref<8x7xi32, #tpu.memory_space<vmem>>, vector<1x7xi32>,
    %429 = arith.index_cast %c3_i32_123 : i32 to index
    %c0_128 = arith.constant 0 : index
    %430 = vector.load %arg12[%429, %c0_128] : memref<8x7xf32, #tpu.memory_space<vmem>>, vector<1x7xf32>
    %431 = arith.addf %420, %430 : vector<1x7xf32>
    %432 = vector.shape_cast %431 : vector<1x7xf32> to vector<7x1xf32>
    %c4_i32_129 = arith.constant 4 : i32
    %433 = vector.broadcast %432 : vector<7x1xf32> to vector<7x7xf32>
    %434 = arith.addf %433, %360 : vector<7x7xf32>
    %cst_130 = arith.constant dense<0xFF800000> : vector<7xf32>
    %435 = vector.multi_reduction <maximumf>, %434, %cst_130 [0] : vector<7x7xf32> to vector<7xf32>
    %436 = vector.shape_cast %435 : vector<7xf32> to vector<1x7xf32>
    %437 = vector.broadcast %436 : vector<1x7xf32> to vector<7x7xf32>
    %438 = arith.cmpf oeq, %434, %437 : vector<7x7xf32>
    %c7_i32_131 = arith.constant 7 : i32
    %439 = vector.broadcast %c7_i32_131 : i32 to vector<7x7xi32>
    %440 = arith.select %438, %361, %439 : vector<7x7xi1>, vector<7x7xi32>
    %cst_132 = arith.constant dense<2147483647> : vector<7xi32>
    %441 = vector.multi_reduction <minsi>, %440, %cst_132 [0] : vector<7x7xi32> to vector<7xi32>
    %442 = vector.shape_cast %441 : vector<7xi32> to vector<1x7xi32>
    %443 = arith.index_cast %c4_i32_129 : i32 to index
    %c0_133 = arith.constant 0 : index
    %444 = vector.load %arg16[%443, %c0_133] : memref<8x7xi32, #tpu.memory_space<vmem>>, vector<1x7xi32>
    tpu.vector_store %arg16[%443, %c0_133], %442 {strides = array<i32>} : memref<8x7xi32, #tpu.memory_space<vmem>>, vector<1x7xi32>,
    %445 = arith.index_cast %c4_i32_129 : i32 to index
    %c0_134 = arith.constant 0 : index
    %446 = vector.load %arg12[%445, %c0_134] : memref<8x7xf32, #tpu.memory_space<vmem>>, vector<1x7xf32>
    %447 = arith.addf %436, %446 : vector<1x7xf32>
    %448 = vector.shape_cast %447 : vector<1x7xf32> to vector<7x1xf32>
    %c5_i32_135 = arith.constant 5 : i32
    %449 = vector.broadcast %448 : vector<7x1xf32> to vector<7x7xf32>
    %450 = arith.addf %449, %360 : vector<7x7xf32>
    %cst_136 = arith.constant dense<0xFF800000> : vector<7xf32>
    %451 = vector.multi_reduction <maximumf>, %450, %cst_136 [0] : vector<7x7xf32> to vector<7xf32>
    %452 = vector.shape_cast %451 : vector<7xf32> to vector<1x7xf32>
    %453 = vector.broadcast %452 : vector<1x7xf32> to vector<7x7xf32>
    %454 = arith.cmpf oeq, %450, %453 : vector<7x7xf32>
    %c7_i32_137 = arith.constant 7 : i32
    %455 = vector.broadcast %c7_i32_137 : i32 to vector<7x7xi32>
    %456 = arith.select %454, %361, %455 : vector<7x7xi1>, vector<7x7xi32>
    %cst_138 = arith.constant dense<2147483647> : vector<7xi32>
    %457 = vector.multi_reduction <minsi>, %456, %cst_138 [0] : vector<7x7xi32> to vector<7xi32>
    %458 = vector.shape_cast %457 : vector<7xi32> to vector<1x7xi32>
    %459 = arith.index_cast %c5_i32_135 : i32 to index
    %c0_139 = arith.constant 0 : index
    %460 = vector.load %arg16[%459, %c0_139] : memref<8x7xi32, #tpu.memory_space<vmem>>, vector<1x7xi32>
    tpu.vector_store %arg16[%459, %c0_139], %458 {strides = array<i32>} : memref<8x7xi32, #tpu.memory_space<vmem>>, vector<1x7xi32>,
    %461 = arith.index_cast %c5_i32_135 : i32 to index
    %c0_140 = arith.constant 0 : index
    %462 = vector.load %arg12[%461, %c0_140] : memref<8x7xf32, #tpu.memory_space<vmem>>, vector<1x7xf32>
    %463 = arith.addf %452, %462 : vector<1x7xf32>
    %464 = vector.shape_cast %463 : vector<1x7xf32> to vector<7x1xf32>
    %c6_i32_141 = arith.constant 6 : i32
    %465 = vector.broadcast %464 : vector<7x1xf32> to vector<7x7xf32>
    %466 = arith.addf %465, %360 : vector<7x7xf32>
    %cst_142 = arith.constant dense<0xFF800000> : vector<7xf32>
    %467 = vector.multi_reduction <maximumf>, %466, %cst_142 [0] : vector<7x7xf32> to vector<7xf32>
    %468 = vector.shape_cast %467 : vector<7xf32> to vector<1x7xf32>
    %469 = vector.broadcast %468 : vector<1x7xf32> to vector<7x7xf32>
    %470 = arith.cmpf oeq, %466, %469 : vector<7x7xf32>
    %c7_i32_143 = arith.constant 7 : i32
    %471 = vector.broadcast %c7_i32_143 : i32 to vector<7x7xi32>
    %472 = arith.select %470, %361, %471 : vector<7x7xi1>, vector<7x7xi32>
    %cst_144 = arith.constant dense<2147483647> : vector<7xi32>
    %473 = vector.multi_reduction <minsi>, %472, %cst_144 [0] : vector<7x7xi32> to vector<7xi32>
    %474 = vector.shape_cast %473 : vector<7xi32> to vector<1x7xi32>
    %475 = arith.index_cast %c6_i32_141 : i32 to index
    %c0_145 = arith.constant 0 : index
    %476 = vector.load %arg16[%475, %c0_145] : memref<8x7xi32, #tpu.memory_space<vmem>>, vector<1x7xi32>
    tpu.vector_store %arg16[%475, %c0_145], %474 {strides = array<i32>} : memref<8x7xi32, #tpu.memory_space<vmem>>, vector<1x7xi32>,
    %477 = arith.index_cast %c6_i32_141 : i32 to index
    %c0_146 = arith.constant 0 : index
    %478 = vector.load %arg12[%477, %c0_146] : memref<8x7xf32, #tpu.memory_space<vmem>>, vector<1x7xf32>
    %479 = arith.addf %468, %478 : vector<1x7xf32>
    %480 = vector.shape_cast %479 : vector<1x7xf32> to vector<7x1xf32>
    %c7_i32_147 = arith.constant 7 : i32
    %481 = vector.broadcast %480 : vector<7x1xf32> to vector<7x7xf32>
    %482 = arith.addf %481, %360 : vector<7x7xf32>
    %cst_148 = arith.constant dense<0xFF800000> : vector<7xf32>
    %483 = vector.multi_reduction <maximumf>, %482, %cst_148 [0] : vector<7x7xf32> to vector<7xf32>
    %484 = vector.shape_cast %483 : vector<7xf32> to vector<1x7xf32>
    %485 = vector.broadcast %484 : vector<1x7xf32> to vector<7x7xf32>
    %486 = arith.cmpf oeq, %482, %485 : vector<7x7xf32>
    %c7_i32_149 = arith.constant 7 : i32
    %487 = vector.broadcast %c7_i32_149 : i32 to vector<7x7xi32>
    %488 = arith.select %486, %361, %487 : vector<7x7xi1>, vector<7x7xi32>
    %cst_150 = arith.constant dense<2147483647> : vector<7xi32>
    %489 = vector.multi_reduction <minsi>, %488, %cst_150 [0] : vector<7x7xi32> to vector<7xi32>
    %490 = vector.shape_cast %489 : vector<7xi32> to vector<1x7xi32>
    %491 = arith.index_cast %c7_i32_147 : i32 to index
    %c0_151 = arith.constant 0 : index
    %492 = vector.load %arg16[%491, %c0_151] : memref<8x7xi32, #tpu.memory_space<vmem>>, vector<1x7xi32>
    tpu.vector_store %arg16[%491, %c0_151], %490 {strides = array<i32>} : memref<8x7xi32, #tpu.memory_space<vmem>>, vector<1x7xi32>,
    %493 = arith.index_cast %c7_i32_147 : i32 to index
    %c0_152 = arith.constant 0 : index
    %494 = vector.load %arg12[%493, %c0_152] : memref<8x7xf32, #tpu.memory_space<vmem>>, vector<1x7xf32>
    %495 = arith.addf %484, %494 : vector<1x7xf32>
    %496 = vector.shape_cast %495 : vector<1x7xf32> to vector<7x1xf32>
    %c8_i32_153 = arith.constant 8 : i32
    %497 = vector.extract_strided_slice %360 {offsets = [0, 6], sizes = [7, 1], strides = [1, 1]} : vector<7x7xf32> to vector<7x1xf32>
    %498 = arith.addf %496, %497 : vector<7x1xf32>
    %cst_154 = arith.constant dense<0xFF800000> : vector<1xf32>
    %499 = vector.multi_reduction <maximumf>, %498, %cst_154 [0] : vector<7x1xf32> to vector<1xf32>
    %500 = vector.shape_cast %499 : vector<1xf32> to vector<1x1xf32>
    %c0_155 = arith.constant 0 : index
    %c0_156 = arith.constant 0 : index
    %501 = vector.load %arg10[%c0_155, %c0_156] : memref<1x1xf32, #tpu.memory_space<vmem>>, vector<1x1xf32>
    tpu.vector_store %arg10[%c0_155, %c0_156], %500 {strides = array<i32>} : memref<1x1xf32, #tpu.memory_space<vmem>>, vector<1x1xf32>,
    %502 = vector.broadcast %500 : vector<1x1xf32> to vector<7x1xf32>
    %503 = arith.cmpf oeq, %498, %502 : vector<7x1xf32>
    %c7_i32_157 = arith.constant 7 : i32
    %504 = vector.broadcast %c7_i32_157 : i32 to vector<7x1xi32>
    %505 = arith.select %503, %362, %504 : vector<7x1xi1>, vector<7x1xi32>
    %506 = vector.shape_cast %505 : vector<7x1xi32> to vector<1x7x1xi32>
    %cst_158 = arith.constant dense<2147483647> : vector<1xi32>
    %507 = vector.multi_reduction <minsi>, %506, %cst_158 [1, 2] : vector<1x7x1xi32> to vector<1xi32>
    %508 = vector.shape_cast %507 : vector<1xi32> to vector<1x1x1xi32>
    %509 = vector.extract %508[0, 0, 0] : i32 from vector<1x1x1xi32>
    %c0_i32_159 = arith.constant 0 : i32
    %c7_i32_160 = arith.constant 7 : i32
    %510 = arith.subi %c7_i32_160, %c0_i32_159 : i32
    %511 = arith.index_cast %510 : i32 to index
    %512 = memref.load %arg11[%511] : memref<8xi32, #tpu.memory_space<smem>>
    memref.store %509, %arg11[%511] : memref<8xi32, #tpu.memory_space<smem>>
    %513 = arith.index_cast %510 : i32 to index
    %c0_161 = arith.constant 0 : index
    %514 = vector.load %arg16[%513, %c0_161] : memref<8x7xi32, #tpu.memory_space<vmem>>, vector<1x7xi32>
    %515 = vector.broadcast %509 : i32 to vector<1x7xi32>
    %516 = arith.cmpi eq, %363, %515 : vector<1x7xi32>
    %c7_i32_162 = arith.constant 7 : i32
    %517 = vector.broadcast %c7_i32_162 : i32 to vector<1x7xi32>
    %518 = arith.select %516, %514, %517 : vector<1x7xi1>, vector<1x7xi32>
    %519 = vector.shape_cast %518 : vector<1x7xi32> to vector<1x1x7xi32>
    %cst_163 = arith.constant dense<2147483647> : vector<1xi32>
    %520 = vector.multi_reduction <minsi>, %519, %cst_163 [1, 2] : vector<1x1x7xi32> to vector<1xi32>
    %521 = vector.shape_cast %520 : vector<1xi32> to vector<1x1x1xi32>
    %522 = vector.extract %521[0, 0, 0] : i32 from vector<1x1x1xi32>
    %c1_i32_164 = arith.constant 1 : i32
    %c7_i32_165 = arith.constant 7 : i32
    %523 = arith.subi %c7_i32_165, %c1_i32_164 : i32
    %524 = arith.index_cast %523 : i32 to index
    %525 = memref.load %arg11[%524] : memref<8xi32, #tpu.memory_space<smem>>
    memref.store %522, %arg11[%524] : memref<8xi32, #tpu.memory_space<smem>>
    %526 = arith.index_cast %523 : i32 to index
    %c0_166 = arith.constant 0 : index
    %527 = vector.load %arg16[%526, %c0_166] : memref<8x7xi32, #tpu.memory_space<vmem>>, vector<1x7xi32>
    %528 = vector.broadcast %522 : i32 to vector<1x7xi32>
    %529 = arith.cmpi eq, %363, %528 : vector<1x7xi32>
    %c7_i32_167 = arith.constant 7 : i32
    %530 = vector.broadcast %c7_i32_167 : i32 to vector<1x7xi32>
    %531 = arith.select %529, %527, %530 : vector<1x7xi1>, vector<1x7xi32>
    %532 = vector.shape_cast %531 : vector<1x7xi32> to vector<1x1x7xi32>
    %cst_168 = arith.constant dense<2147483647> : vector<1xi32>
    %533 = vector.multi_reduction <minsi>, %532, %cst_168 [1, 2] : vector<1x1x7xi32> to vector<1xi32>
    %534 = vector.shape_cast %533 : vector<1xi32> to vector<1x1x1xi32>
    %535 = vector.extract %534[0, 0, 0] : i32 from vector<1x1x1xi32>
    %c2_i32_169 = arith.constant 2 : i32
    %c7_i32_170 = arith.constant 7 : i32
    %536 = arith.subi %c7_i32_170, %c2_i32_169 : i32
    %537 = arith.index_cast %536 : i32 to index
    %538 = memref.load %arg11[%537] : memref<8xi32, #tpu.memory_space<smem>>
    memref.store %535, %arg11[%537] : memref<8xi32, #tpu.memory_space<smem>>
    %539 = arith.index_cast %536 : i32 to index
    %c0_171 = arith.constant 0 : index
    %540 = vector.load %arg16[%539, %c0_171] : memref<8x7xi32, #tpu.memory_space<vmem>>, vector<1x7xi32>
    %541 = vector.broadcast %535 : i32 to vector<1x7xi32>
    %542 = arith.cmpi eq, %363, %541 : vector<1x7xi32>
    %c7_i32_172 = arith.constant 7 : i32
    %543 = vector.broadcast %c7_i32_172 : i32 to vector<1x7xi32>
    %544 = arith.select %542, %540, %543 : vector<1x7xi1>, vector<1x7xi32>
    %545 = vector.shape_cast %544 : vector<1x7xi32> to vector<1x1x7xi32>
    %cst_173 = arith.constant dense<2147483647> : vector<1xi32>
    %546 = vector.multi_reduction <minsi>, %545, %cst_173 [1, 2] : vector<1x1x7xi32> to vector<1xi32>
    %547 = vector.shape_cast %546 : vector<1xi32> to vector<1x1x1xi32>
    %548 = vector.extract %547[0, 0, 0] : i32 from vector<1x1x1xi32>
    %c3_i32_174 = arith.constant 3 : i32
    %c7_i32_175 = arith.constant 7 : i32
    %549 = arith.subi %c7_i32_175, %c3_i32_174 : i32
    %550 = arith.index_cast %549 : i32 to index
    %551 = memref.load %arg11[%550] : memref<8xi32, #tpu.memory_space<smem>>
    memref.store %548, %arg11[%550] : memref<8xi32, #tpu.memory_space<smem>>
    %552 = arith.index_cast %549 : i32 to index
    %c0_176 = arith.constant 0 : index
    %553 = vector.load %arg16[%552, %c0_176] : memref<8x7xi32, #tpu.memory_space<vmem>>, vector<1x7xi32>
    %554 = vector.broadcast %548 : i32 to vector<1x7xi32>
    %555 = arith.cmpi eq, %363, %554 : vector<1x7xi32>
    %c7_i32_177 = arith.constant 7 : i32
    %556 = vector.broadcast %c7_i32_177 : i32 to vector<1x7xi32>
    %557 = arith.select %555, %553, %556 : vector<1x7xi1>, vector<1x7xi32>
    %558 = vector.shape_cast %557 : vector<1x7xi32> to vector<1x1x7xi32>
    %cst_178 = arith.constant dense<2147483647> : vector<1xi32>
    %559 = vector.multi_reduction <minsi>, %558, %cst_178 [1, 2] : vector<1x1x7xi32> to vector<1xi32>
    %560 = vector.shape_cast %559 : vector<1xi32> to vector<1x1x1xi32>
    %561 = vector.extract %560[0, 0, 0] : i32 from vector<1x1x1xi32>
    %c4_i32_179 = arith.constant 4 : i32
    %c7_i32_180 = arith.constant 7 : i32
    %562 = arith.subi %c7_i32_180, %c4_i32_179 : i32
    %563 = arith.index_cast %562 : i32 to index
    %564 = memref.load %arg11[%563] : memref<8xi32, #tpu.memory_space<smem>>
    memref.store %561, %arg11[%563] : memref<8xi32, #tpu.memory_space<smem>>
    %565 = arith.index_cast %562 : i32 to index
    %c0_181 = arith.constant 0 : index
    %566 = vector.load %arg16[%565, %c0_181] : memref<8x7xi32, #tpu.memory_space<vmem>>, vector<1x7xi32>
    %567 = vector.broadcast %561 : i32 to vector<1x7xi32>
    %568 = arith.cmpi eq, %363, %567 : vector<1x7xi32>
    %c7_i32_182 = arith.constant 7 : i32
    %569 = vector.broadcast %c7_i32_182 : i32 to vector<1x7xi32>
    %570 = arith.select %568, %566, %569 : vector<1x7xi1>, vector<1x7xi32>
    %571 = vector.shape_cast %570 : vector<1x7xi32> to vector<1x1x7xi32>
    %cst_183 = arith.constant dense<2147483647> : vector<1xi32>
    %572 = vector.multi_reduction <minsi>, %571, %cst_183 [1, 2] : vector<1x1x7xi32> to vector<1xi32>
    %573 = vector.shape_cast %572 : vector<1xi32> to vector<1x1x1xi32>
    %574 = vector.extract %573[0, 0, 0] : i32 from vector<1x1x1xi32>
    %c5_i32_184 = arith.constant 5 : i32
    %c7_i32_185 = arith.constant 7 : i32
    %575 = arith.subi %c7_i32_185, %c5_i32_184 : i32
    %576 = arith.index_cast %575 : i32 to index
    %577 = memref.load %arg11[%576] : memref<8xi32, #tpu.memory_space<smem>>
    memref.store %574, %arg11[%576] : memref<8xi32, #tpu.memory_space<smem>>
    %578 = arith.index_cast %575 : i32 to index
    %c0_186 = arith.constant 0 : index
    %579 = vector.load %arg16[%578, %c0_186] : memref<8x7xi32, #tpu.memory_space<vmem>>, vector<1x7xi32>
    %580 = vector.broadcast %574 : i32 to vector<1x7xi32>
    %581 = arith.cmpi eq, %363, %580 : vector<1x7xi32>
    %c7_i32_187 = arith.constant 7 : i32
    %582 = vector.broadcast %c7_i32_187 : i32 to vector<1x7xi32>
    %583 = arith.select %581, %579, %582 : vector<1x7xi1>, vector<1x7xi32>
    %584 = vector.shape_cast %583 : vector<1x7xi32> to vector<1x1x7xi32>
    %cst_188 = arith.constant dense<2147483647> : vector<1xi32>
    %585 = vector.multi_reduction <minsi>, %584, %cst_188 [1, 2] : vector<1x1x7xi32> to vector<1xi32>
    %586 = vector.shape_cast %585 : vector<1xi32> to vector<1x1x1xi32>
    %587 = vector.extract %586[0, 0, 0] : i32 from vector<1x1x1xi32>
    %c6_i32_189 = arith.constant 6 : i32
    %c7_i32_190 = arith.constant 7 : i32
    %588 = arith.subi %c7_i32_190, %c6_i32_189 : i32
    %589 = arith.index_cast %588 : i32 to index
    %590 = memref.load %arg11[%589] : memref<8xi32, #tpu.memory_space<smem>>
    memref.store %587, %arg11[%589] : memref<8xi32, #tpu.memory_space<smem>>
    %591 = arith.index_cast %588 : i32 to index
    %c0_191 = arith.constant 0 : index
    %592 = vector.load %arg16[%591, %c0_191] : memref<8x7xi32, #tpu.memory_space<vmem>>, vector<1x7xi32>
    %593 = vector.broadcast %587 : i32 to vector<1x7xi32>
    %594 = arith.cmpi eq, %363, %593 : vector<1x7xi32>
    %c7_i32_192 = arith.constant 7 : i32
    %595 = vector.broadcast %c7_i32_192 : i32 to vector<1x7xi32>
    %596 = arith.select %594, %592, %595 : vector<1x7xi1>, vector<1x7xi32>
    %597 = vector.shape_cast %596 : vector<1x7xi32> to vector<1x1x7xi32>
    %cst_193 = arith.constant dense<2147483647> : vector<1xi32>
    %598 = vector.multi_reduction <minsi>, %597, %cst_193 [1, 2] : vector<1x1x7xi32> to vector<1xi32>
    %599 = vector.shape_cast %598 : vector<1xi32> to vector<1x1x1xi32>
    %600 = vector.extract %599[0, 0, 0] : i32 from vector<1x1x1xi32>
    %c7_i32_194 = arith.constant 7 : i32
    %c7_i32_195 = arith.constant 7 : i32
    %601 = arith.subi %c7_i32_195, %c7_i32_194 : i32
    %602 = arith.index_cast %601 : i32 to index
    %603 = memref.load %arg11[%602] : memref<8xi32, #tpu.memory_space<smem>>
    memref.store %600, %arg11[%602] : memref<8xi32, #tpu.memory_space<smem>>
    %604 = arith.index_cast %601 : i32 to index
    %c0_196 = arith.constant 0 : index
    %605 = vector.load %arg16[%604, %c0_196] : memref<8x7xi32, #tpu.memory_space<vmem>>, vector<1x7xi32>
    %606 = vector.broadcast %600 : i32 to vector<1x7xi32>
    %607 = arith.cmpi eq, %363, %606 : vector<1x7xi32>
    %c7_i32_197 = arith.constant 7 : i32
    %608 = vector.broadcast %c7_i32_197 : i32 to vector<1x7xi32>
    %609 = arith.select %607, %605, %608 : vector<1x7xi1>, vector<1x7xi32>
    %610 = vector.shape_cast %609 : vector<1x7xi32> to vector<1x1x7xi32>
    %cst_198 = arith.constant dense<2147483647> : vector<1xi32>
    %611 = vector.multi_reduction <minsi>, %610, %cst_198 [1, 2] : vector<1x1x7xi32> to vector<1xi32>
    %612 = vector.shape_cast %611 : vector<1xi32> to vector<1x1x1xi32>
    %613 = vector.extract %612[0, 0, 0] : i32 from vector<1x1x1xi32>
    %c8_i32_199 = arith.constant 8 : i32
    return
  }
}

</mosaic_0001>

<bundles_post_ra>
// kernel: tpu_custom_call.1
= control target key start
LH: loop header
LB: loop body
LE: loop exit
PB: predicated region body
PF: predicated region fallthrough
CT: control target
= control target key end

     0   :  { %18 = vsyncpa [#allocation7], 0  ;;  %s2513_s0 = inlined_call_operand.vmem [shape: f32[16,16], index: 0, kind: input, shape index: {}]   ;;  %s2514_s1 = inlined_call_operand.vmem [shape: f32[16,128], index: 1, kind: input, shape index: {}]   ;;  %s2515_s2 = inlined_call_operand.vmem [shape: f32[16,128], index: 2, kind: input, shape index: {}]   ;;  %s2516_s3 = inlined_call_operand.hbm [shape: f32[1,128], index: 3, kind: input, shape index: {}]   ;;  %s2517_s4 = inlined_call_operand.vmem [shape: f32[2,16], index: 4, kind: input, shape index: {}]   ;;  %s2518_s5 = inlined_call_operand.hbm [shape: f32[2,16], index: 5, kind: input, shape index: {}]   ;;  %s2519_s6 = inlined_call_operand.vmem [shape: f32[16,7], index: 6, kind: input, shape index: {}]   ;;  %s2520_s7 = inlined_call_operand.vmem [shape: f32[16,7], index: 7, kind: input, shape index: {}]   ;;  %s2521_s8 = inlined_call_operand.vmem [shape: f32[1,7], index: 8, kind: input, shape index: {}]   ;;  %s2522_s9 = inlined_call_operand.vmem [shape: f32[7,7], index: 9, kind: input, shape index: {}]   ;;  %s2523_s10 = inlined_call_operand.hbm [shape: f32[1,1], index: 10, kind: output, shape index: {0}]   ;;  %s2524_s11 = inlined_call_operand.hbm [shape: s32[8], index: 11, kind: output, shape index: {1}]   ;;  %s2525_s12 = inlined_call_operand.hbm [shape: f32[8,7], index: 12, kind: output, shape index: {2}]  }
   0x1   :  { %19 = vsyncpa [#allocation11], 0 }
   0x2   :  { %20 = vsyncpa [#allocation8], 0 }
   0x3   :  { %21 = vsyncpa [#allocation9], 0 }
   0x4   :  { %22 = vsyncpa [#allocation15], 0  ;;  %s2131_s21 = smov [#allocation6]   ;;  %s2132_s23 = smov [#allocation10]  }
   0x5   :  { %s35_s22 = sshll.u32 %s2131_s21, 4  ;;  %s47_s24 = sshll.u32 %s2132_s23, 4  ;;  %s36_s22 = int_to_ptr.vmem [resolvable:$true] %s35_s22  ;;  %s48_s24 = int_to_ptr.vmem [resolvable:$true] %s47_s24 }
   0x6   :  { %s2023_s27 = scalar_lea.hbm %s2516_s3, 16 }
   0x7   :  { %p2024_p0 = scmp.ne.s32.totalorder %s2516_s3, %s2023_s27  ;;  %p2027_p1 = scmp.lt.u32.totalorder %s2023_s27, %s2516_s3 }
   0x9   :  { %p2029_p2 = pnand %p2027_p1, %p2024_p0 }
   0xb   :  { %2032 = shalt.err (!%p2029_p2)
}
   0xc   :  { %s2033_s14 = scalar_lea.vmem %s36_s22, 16  ;;  %s2037_s15 = scalar_lea.vmem %s36_s22, 32 }
   0xd   :  { %p2034_p3 = scmp.ne.s32.totalorder %s36_s22, %s2033_s14  ;;  %p2038_p4 = scmp.lt.s32.totalorder %s36_s22, %s36_s22 }
   0xe   :  { %p2039_p5 = scmp.lt.s32.totalorder %s2037_s15, %s2033_s14 }
  0x10   :  { %p2040_p6 = por %p2039_p5, %p2038_p4 }
  0x12   :  { %p2041_p7 = pnand %p2040_p6, %p2034_p3 }
  0x14   :  { %2044 = shalt.err (!%p2041_p7)
}
  0x15   :  { %38 = dma.hbm_to_vmem [thread:$0]  %s2516_s3, 16, %s36_s22, [#allocation7]  }
  0x16   :  { %s2045_s20 = scalar_lea.hbm %s2518_s5, 32 }
  0x17   :  { %p2046_p8 = scmp.ne.s32.totalorder %s2518_s5, %s2045_s20  ;;  %p2049_p9 = scmp.lt.u32.totalorder %s2045_s20, %s2518_s5 }
  0x19   :  { %p2051_p10 = pnand %p2049_p9, %p2046_p8 }
  0x1b   :  { %2054 = shalt.err (!%p2051_p10)
}
  0x1c   :  { %s2055_s27 = scalar_lea.vmem %s48_s24, 32  ;;  %p2060_p12 = scmp.lt.s32.totalorder %s48_s24, %s48_s24 }
  0x1d   :  { %p2056_p11 = scmp.ne.s32.totalorder %s48_s24, %s2055_s27  ;;  %p2061_p13 = scmp.lt.s32.totalorder %s2055_s27, %s2055_s27 }
  0x1f   :  { %p2062_p0 = por %p2061_p13, %p2060_p12 }
  0x21   :  { %p2063_p1 = pnand %p2062_p0, %p2056_p11 }
  0x23   :  { %2066 = shalt.err (!%p2063_p1)
}
  0x24   :  { %50 = dma.hbm_to_vmem [thread:$0]  %s2518_s5, 32, %s48_s24, [#allocation11]  }
  0x25   :  { %2121 = dma.done.wait [#allocation7], 16  }
  0x26   :  { %2122 = vsyncadd [#allocation7], 4294967280 }
  0x27   :  { %2123 = dma.done.wait [#allocation11], 32  }
  0x28   :  { %2124 = vsyncadd [#allocation11], 4294967264  ;;  %v2133_v0 = vmov 0.0|0.0   ;;  %vm2134_vm0 = vmmov 0   ;;  %v2135_v1 = vmov 0.0   ;;  %vm76_vm1 = vcmask 130048  }
  0x29   :  { %1898 = vmatprep.subr.bf16.mxu1 %v2133_v0  ;;  %1828 = vmatprep.mubr.msk.f32.mxu1 %vm2134_vm0, %v2135_v1  ;;  %v67_v2 = vld [vmem:[%s2514_s1] sm:$0xff]  ;;  %v68_v3 = vld [vmem:[%s2514_s1 + $0x8] sm:$0xff]  ;;  %v162_v21 = vlaneseq  ;;  %s2139_s21 = smov 32   ;;  %s2140_s23 = smov 80   ;;  %vm281_vm3 = vcmask 122880   ;;  %vm283_vm4 = vcmask 123905  }
  0x2a   :  { %v65_v4 = vld [vmem:[%s2513_s0] sm:$0xff]  ;;  %v1894_v5 = vpack.c.bf16 %v68_v3, %v67_v2  ;;  %v161_v7 = vld [vmem:[%s2515_s2 + $0x8] sm:$0xff]  ;;  %vm1216_vm6 = vcmask 55296   ;;  %vm1236_vm7 = vcmask 49152   ;;  %vm1208_vm8 = vcmask 56320   ;;  %s2142_s1 = smov 122  }
  0x2b   :  { %1821 = vmatprep.mubr.msk.f32.mxu0 %vm76_vm1, %v65_v4  ;;  %v160_v6 = vld [vmem:[%s2515_s2] sm:$0xff]  ;;  %v66_v9 = vld [vmem:[%s2513_s0 + $0x8] sm:$0xff]  ;;  %s2136_s0 = smov 16   ;;  %s2137_s2 = smov 64   ;;  %v2278_v22 = vshrl.u32 %v162_v21, 7 }
  0x2c   :  { %v2254_v8 = vpack.c.bf16 %v161_v7, %v160_v6  ;;  %1895 = vmatprep.subr.bf16.mxu0 %v1894_v5  ;;  %v165_v10 = vld [vmem:[%s2517_s4] sm:$0x3]  ;;  %v166_v11 = vld [vmem:[#allocation10] sm:$0x3]  ;;  %v1761_v12 = vld [vmem:[#allocation6] ss:$0 sm:$0xff] }
  0x2d   :  { %1897 = vmatpush3.bf16.msra.mxu0 %v1894_v5  ;;  %257 = vrot.lane.b32.xlu1 %v166_v11, %s2136_s0  ;;  %vm164_vm2 = vcmp.eq.s32.totalorder %v2278_v22, 0  ;;  %s2138_s4 = smov 96   ;;  %vm1213_vm5 = vcmp.eq.s32.totalorder %v2278_v22, 5  ;;  %s2143_s18 = smov [#allocation12]  }
  0x2e   :  { %1900 = vmatpush3.bf16.msra.mxu1 %v2254_v8  ;;  %1901 = vmatprep.subr.bf16.mxu0 %v2133_v0  ;;  %s1724_s19 = sshll.u32 %s2143_s18, 4  ;;  %s2144_s20 = smov [#allocation14]   ;;  %s1725_s19 = int_to_ptr.vmem [resolvable:$true] %s1724_s19 }
  0x2f   :  { %1904 = vmatprep.subr.bf16.mxu1 %v2133_v0  ;;  %p2072_p3 = scmp.lt.s32.totalorder %s1725_s19, %s1725_s19 }
  0x30   :  { %1822 = vmatmul.mubr.msk.f32.vlgmr.msra.gmra.mrb[0].mxu0 %vm76_vm1, %v66_v9 }
  0x31   :  { %1829 = vmatmul.mubr.msk.f32.vlgmr.msra.gmra.mrb[0].mxu1 %vm76_vm1, %v165_v10  ;;  %1903 = vmatpush3.bf16.msra.mxu0 %v2254_v8 }
  0x32   :  { %1835 = vmatprep.mubr.msk.f32.mxu0 %vm2134_vm0, %v2135_v1  ;;  %1906 = vmatpush3.bf16.msra.mxu1 %v2254_v8 }
  0x33   :  { %1842 = vmatprep.mubr.msk.f32.mxu1 %vm2134_vm0, %v2135_v1  ;;  %1907 = vmatprep.subr.bf16.mxu0 %v2133_v0 }
  0x34   :  { %1910 = vmatprep.subr.bf16.mxu1 %v2133_v0 }
  0x9f   :  { %v258_v32 = vpop.permute.xlu1 %257 }
 0x103   :  { %v1823_v13 = vpop.f32.mrb[0].mxu0 }
 0x104   :  { %v237_v14 = vpop.f32.mrb[0].mxu1  ;;  %v155_v15 = vadd.f32 %v1823_v13, %v1761_v12  ;;  %v149_v16 = vpop.f32.mrb[1].mxu0 }
 0x105   :  { %v1830_v17 = vpop.f32.mrb[1].mxu1  ;;  %v150_v18 = vadd.f32 %v1761_v12, %v149_v16 }
 0x106   :  { %159 = vst [vmem:[#allocation2 + $0x8] sm:$0xff] %v155_v15 }
 0x107   :  { %158 = vst [vmem:[#allocation2] sm:$0xff] %v150_v18 }
 0x10e   :  { %v167_v19 = vld [vmem:[#allocation2] sm:$0x3]  ;;  %v285_v40 = vld [vmem:[#allocation2 + $0x2] sm:$0x3]  ;;  %v394_v60 = vld [vmem:[#allocation2 + $0x4] sm:$0x3] }
 0x10f   :  { %v241_v20 = vadd.f32 %v237_v14, %v167_v19  ;;  %v503_v19 = vld [vmem:[#allocation2 + $0x6] sm:$0x3] }
 0x111   :  { %245 = vrot.lane.b32.xlu0 %v241_v20, %s2137_s2 }
 0x183   :  { %v246_v23 = vpop.permute.xlu0 %245 }
 0x184   :  { %v248_v24 = vsel %vm164_vm2, %v241_v20, %v246_v23 }
 0x185   :  { %1959 = vtanh.f32 %v248_v24  ;;  %v1765_v26 = vmul.f32 -1.442695, %v248_v24 }
 0x187   :  { %1961 = vpow2.f32 %v1765_v26 }
 0x18f   :  { %v1960_v25 = vpop.eup %1959 }
 0x190   :  { %262 = vrot.lane.b32.xlu0 %v1960_v25, %s2138_s4 }
 0x191   :  { %v1962_v27 = vpop.eup %1961 }
 0x192   :  { %v252_v28 = vadd.f32 1.0, %v1962_v27 }
 0x194   :  { %1963 = vrcp.f32 %v252_v28 }
 0x19e   :  { %v1964_v29 = vpop.eup %1963 }
 0x19f   :  { %v260_v33 = vmul.f32 %v1964_v29, %v258_v32 }
 0x202   :  { %v263_v30 = vpop.permute.xlu0 %262 }
 0x203   :  { %v265_v31 = vmul.f32 %v1964_v29, %v263_v30 }
 0x205   :  { %267 = vrot.lane.b32.xlu1 %v265_v31, %s2136_s0 }
 0x277   :  { %v268_v34 = vpop.permute.xlu1 %267 }
 0x278   :  { %v270_v35 = vadd.f32 %v268_v34, %v260_v33 }
 0x27a   :  { %1965 = vtanh.f32 %v270_v35 }
 0x284   :  { %v1966_v36 = vpop.eup %1965 }
 0x285   :  { %273 = vrot.lane.b32.xlu0 %v1966_v36, %s2139_s21 }
 0x2f7   :  { %v274_v37 = vpop.permute.xlu0 %273 }
 0x2f8   :  { %v276_v38 = vmul.f32 %v1964_v29, %v274_v37 }
 0x2fa   :  { %278 = vrot.lane.b32.xlu1 %v276_v38, %s2140_s23 }
 0x36c   :  { %v279_v39 = vpop.permute.xlu1 %278 }
 0x36d   :  { %282 = vst.msk [vmem:[#allocation3] sm:$0x1] %vm281_vm3, %v279_v39  ;;  %1836 = vmatmul.mubr.msk.f32.vlgmr.msra.gmra.mrb[2].mxu0 %vm76_vm1, %v279_v39 }
 0x36e   :  { %284 = vst.msk [vmem:[#allocation4 + $0x6] sm:$0x2] %vm283_vm4, %v279_v39  ;;  %1909 = vmatpush3.bf16.msra.mxu0 %v2254_v8  ;;  %1849 = vmatprep.mubr.msk.f32.mxu0 %vm2134_vm0, %v2135_v1 }
 0x36f   :  { %1913 = vmatprep.subr.bf16.mxu0 %v2133_v0 }
 0x440   :  { %v354_v41 = vpop.f32.mrb[2].mxu0 }
 0x441   :  { %v358_v42 = vadd.f32 %v354_v41, %v285_v40  ;;  %v1837_v43 = vpop.f32.mrb[3].mxu0  ;;  %v612_v41 = vld [vmem:[#allocation2 + $0x8] sm:$0x3] }
 0x443   :  { %360 = vrot.lane.b32.xlu0 %v358_v42, %s2137_s2 }
 0x4b5   :  { %v361_v44 = vpop.permute.xlu0 %360 }
 0x4b6   :  { %v363_v45 = vsel %vm164_vm2, %v358_v42, %v361_v44 }
 0x4b7   :  { %1967 = vtanh.f32 %v363_v45  ;;  %v1767_v47 = vmul.f32 -1.442695, %v363_v45 }
 0x4b9   :  { %1969 = vpow2.f32 %v1767_v47 }
 0x4c1   :  { %v1968_v46 = vpop.eup %1967 }
 0x4c2   :  { %373 = vrot.lane.b32.xlu1 %v1968_v46, %s2138_s4 }
 0x4c3   :  { %v1970_v48 = vpop.eup %1969 }
 0x4c4   :  { %v367_v49 = vadd.f32 1.0, %v1970_v48 }
 0x4c6   :  { %1971 = vrcp.f32 %v367_v49 }
 0x4d0   :  { %v1972_v50 = vpop.eup %1971 }
 0x4d1   :  { %v371_v53 = vmul.f32 %v1972_v50, %v270_v35 }
 0x534   :  { %v374_v51 = vpop.permute.xlu1 %373 }
 0x535   :  { %v376_v52 = vmul.f32 %v1972_v50, %v374_v51 }
 0x537   :  { %378 = vrot.lane.b32.xlu0 %v376_v52, %s2136_s0 }
 0x5a9   :  { %v379_v54 = vpop.permute.xlu0 %378 }
 0x5aa   :  { %v381_v55 = vadd.f32 %v379_v54, %v371_v53 }
 0x5ac   :  { %1973 = vtanh.f32 %v381_v55 }
 0x5b6   :  { %v1974_v56 = vpop.eup %1973 }
 0x5b7   :  { %384 = vrot.lane.b32.xlu1 %v1974_v56, %s2139_s21 }
 0x629   :  { %v385_v57 = vpop.permute.xlu1 %384 }
 0x62a   :  { %v387_v58 = vmul.f32 %v1972_v50, %v385_v57 }
 0x62c   :  { %389 = vrot.lane.b32.xlu0 %v387_v58, %s2140_s23 }
 0x69e   :  { %v390_v59 = vpop.permute.xlu0 %389 }
 0x69f   :  { %392 = vst.msk [vmem:[#allocation3 + $0x1] sm:$0x1] %vm281_vm3, %v390_v59  ;;  %1843 = vmatmul.mubr.msk.f32.vlgmr.msra.gmra.mrb[2].mxu1 %vm76_vm1, %v390_v59 }
 0x6a0   :  { %393 = vst.msk [vmem:[#allocation4 + $0x5] sm:$0x2] %vm283_vm4, %v390_v59  ;;  %1912 = vmatpush3.bf16.msra.mxu1 %v2254_v8  ;;  %1856 = vmatprep.mubr.msk.f32.mxu1 %vm2134_vm0, %v2135_v1 }
 0x6a1   :  { %1916 = vmatprep.subr.bf16.mxu1 %v2133_v0 }
 0x772   :  { %v463_v61 = vpop.f32.mrb[2].mxu1 }
 0x773   :  { %v467_v62 = vadd.f32 %v463_v61, %v394_v60  ;;  %v1844_v63 = vpop.f32.mrb[3].mxu1  ;;  %v721_v61 = vld [vmem:[#allocation2 + $0xa] sm:$0x3] }
 0x775   :  { %469 = vrot.lane.b32.xlu1 %v467_v62, %s2137_s2 }
 0x7e7   :  { %v470_v2 = vpop.permute.xlu1 %469 }
 0x7e8   :  { %v472_v3 = vsel %vm164_vm2, %v467_v62, %v470_v2 }
 0x7e9   :  { %1975 = vtanh.f32 %v472_v3  ;;  %v1769_v5 = vmul.f32 -1.442695, %v472_v3 }
 0x7eb   :  { %1977 = vpow2.f32 %v1769_v5 }
 0x7f3   :  { %v1976_v4 = vpop.eup %1975 }
 0x7f4   :  { %482 = vrot.lane.b32.xlu0 %v1976_v4, %s2138_s4 }
 0x7f5   :  { %v1978_v6 = vpop.eup %1977 }
 0x7f6   :  { %v476_v7 = vadd.f32 1.0, %v1978_v6 }
 0x7f8   :  { %1979 = vrcp.f32 %v476_v7 }
 0x802   :  { %v1980_v9 = vpop.eup %1979 }
 0x803   :  { %v480_v12 = vmul.f32 %v1980_v9, %v381_v55 }
 0x866   :  { %v483_v10 = vpop.permute.xlu0 %482 }
 0x867   :  { %v485_v11 = vmul.f32 %v1980_v9, %v483_v10 }
 0x869   :  { %487 = vrot.lane.b32.xlu1 %v485_v11, %s2136_s0 }
 0x8db   :  { %v488_v13 = vpop.permute.xlu1 %487 }
 0x8dc   :  { %v490_v14 = vadd.f32 %v488_v13, %v480_v12 }
 0x8de   :  { %1981 = vtanh.f32 %v490_v14 }
 0x8e8   :  { %v1982_v15 = vpop.eup %1981 }
 0x8e9   :  { %493 = vrot.lane.b32.xlu0 %v1982_v15, %s2139_s21 }
 0x95b   :  { %v494_v16 = vpop.permute.xlu0 %493 }
 0x95c   :  { %v496_v17 = vmul.f32 %v1980_v9, %v494_v16 }
 0x95e   :  { %498 = vrot.lane.b32.xlu1 %v496_v17, %s2140_s23 }
 0x9d0   :  { %v499_v18 = vpop.permute.xlu1 %498 }
 0x9d1   :  { %501 = vst.msk [vmem:[#allocation3 + $0x2] sm:$0x1] %vm281_vm3, %v499_v18  ;;  %1850 = vmatmul.mubr.msk.f32.vlgmr.msra.gmra.mrb[4].mxu0 %vm76_vm1, %v499_v18 }
 0x9d2   :  { %502 = vst.msk [vmem:[#allocation4 + $0x4] sm:$0x2] %vm283_vm4, %v499_v18  ;;  %1915 = vmatpush3.bf16.msra.mxu0 %v2254_v8  ;;  %1863 = vmatprep.mubr.msk.f32.mxu0 %vm2134_vm0, %v2135_v1  ;;  %v830_v18 = vld [vmem:[#allocation2 + $0xc] sm:$0x3] }
 0x9d3   :  { %1919 = vmatprep.subr.bf16.mxu0 %v2133_v0 }
 0xaa4   :  { %v572_v20 = vpop.f32.mrb[4].mxu0 }
 0xaa5   :  { %v576_v23 = vadd.f32 %v572_v20, %v503_v19  ;;  %v1851_v24 = vpop.f32.mrb[5].mxu0 }
 0xaa7   :  { %578 = vrot.lane.b32.xlu0 %v576_v23, %s2137_s2 }
 0xb19   :  { %v579_v25 = vpop.permute.xlu0 %578 }
 0xb1a   :  { %v581_v26 = vsel %vm164_vm2, %v576_v23, %v579_v25 }
 0xb1b   :  { %1983 = vtanh.f32 %v581_v26  ;;  %v1771_v28 = vmul.f32 -1.442695, %v581_v26 }
 0xb1d   :  { %1985 = vpow2.f32 %v1771_v28 }
 0xb25   :  { %v1984_v27 = vpop.eup %1983 }
 0xb26   :  { %591 = vrot.lane.b32.xlu1 %v1984_v27, %s2138_s4 }
 0xb27   :  { %v1986_v29 = vpop.eup %1985 }
 0xb28   :  { %v585_v30 = vadd.f32 1.0, %v1986_v29 }
 0xb2a   :  { %1987 = vrcp.f32 %v585_v30 }
 0xb34   :  { %v1988_v31 = vpop.eup %1987 }
 0xb35   :  { %v589_v34 = vmul.f32 %v1988_v31, %v490_v14 }
 0xb98   :  { %v592_v32 = vpop.permute.xlu1 %591 }
 0xb99   :  { %v594_v33 = vmul.f32 %v1988_v31, %v592_v32 }
 0xb9b   :  { %596 = vrot.lane.b32.xlu0 %v594_v33, %s2136_s0 }
 0xc0d   :  { %v597_v35 = vpop.permute.xlu0 %596 }
 0xc0e   :  { %v599_v36 = vadd.f32 %v597_v35, %v589_v34 }
 0xc10   :  { %1989 = vtanh.f32 %v599_v36 }
 0xc1a   :  { %v1990_v37 = vpop.eup %1989 }
 0xc1b   :  { %602 = vrot.lane.b32.xlu1 %v1990_v37, %s2139_s21 }
 0xc8d   :  { %v603_v38 = vpop.permute.xlu1 %602 }
 0xc8e   :  { %v605_v39 = vmul.f32 %v1988_v31, %v603_v38 }
 0xc90   :  { %607 = vrot.lane.b32.xlu0 %v605_v39, %s2140_s23 }
 0xd02   :  { %v608_v40 = vpop.permute.xlu0 %607 }
 0xd03   :  { %610 = vst.msk [vmem:[#allocation3 + $0x3] sm:$0x1] %vm281_vm3, %v608_v40  ;;  %1857 = vmatmul.mubr.msk.f32.vlgmr.msra.gmra.mrb[4].mxu1 %vm76_vm1, %v608_v40 }
 0xd04   :  { %611 = vst.msk [vmem:[#allocation4 + $0x3] sm:$0x2] %vm283_vm4, %v608_v40  ;;  %1918 = vmatpush3.bf16.msra.mxu1 %v2254_v8  ;;  %1870 = vmatprep.mubr.msk.f32.mxu1 %vm2134_vm0, %v2135_v1  ;;  %v939_v40 = vld [vmem:[#allocation2 + $0xe] sm:$0x3] }
 0xd05   :  { %1922 = vmatprep.subr.bf16.mxu1 %v2133_v0 }
 0xdd6   :  { %v681_v42 = vpop.f32.mrb[4].mxu1 }
 0xdd7   :  { %v685_v43 = vadd.f32 %v681_v42, %v612_v41  ;;  %v1858_v44 = vpop.f32.mrb[5].mxu1 }
 0xdd9   :  { %687 = vrot.lane.b32.xlu1 %v685_v43, %s2137_s2 }
 0xe4b   :  { %v688_v45 = vpop.permute.xlu1 %687 }
 0xe4c   :  { %v690_v46 = vsel %vm164_vm2, %v685_v43, %v688_v45 }
 0xe4d   :  { %1991 = vtanh.f32 %v690_v46  ;;  %v1773_v48 = vmul.f32 -1.442695, %v690_v46 }
 0xe4f   :  { %1993 = vpow2.f32 %v1773_v48 }
 0xe57   :  { %v1992_v47 = vpop.eup %1991 }
 0xe58   :  { %700 = vrot.lane.b32.xlu0 %v1992_v47, %s2138_s4 }
 0xe59   :  { %v1994_v49 = vpop.eup %1993 }
 0xe5a   :  { %v694_v50 = vadd.f32 1.0, %v1994_v49 }
 0xe5c   :  { %1995 = vrcp.f32 %v694_v50 }
 0xe66   :  { %v1996_v51 = vpop.eup %1995 }
 0xe67   :  { %v698_v54 = vmul.f32 %v1996_v51, %v599_v36 }
 0xeca   :  { %v701_v52 = vpop.permute.xlu0 %700 }
 0xecb   :  { %v703_v53 = vmul.f32 %v1996_v51, %v701_v52 }
 0xecd   :  { %705 = vrot.lane.b32.xlu1 %v703_v53, %s2136_s0 }
 0xf3f   :  { %v706_v55 = vpop.permute.xlu1 %705 }
 0xf40   :  { %v708_v56 = vadd.f32 %v706_v55, %v698_v54 }
 0xf42   :  { %1997 = vtanh.f32 %v708_v56 }
 0xf4c   :  { %v1998_v57 = vpop.eup %1997 }
 0xf4d   :  { %711 = vrot.lane.b32.xlu0 %v1998_v57, %s2139_s21  ;;  %v1053_v57 = vld [vmem:[%s2520_s7 + $0x8] sm:$0xff] }
 0xfbf   :  { %v712_v58 = vpop.permute.xlu0 %711 }
 0xfc0   :  { %v714_v59 = vmul.f32 %v1996_v51, %v712_v58  ;;  %v1049_v58 = vld [vmem:[%s2519_s6] sm:$0xff] }
 0xfc2   :  { %716 = vrot.lane.b32.xlu1 %v714_v59, %s2140_s23 }
0x1034   :  { %v717_v60 = vpop.permute.xlu1 %716 }
0x1035   :  { %719 = vst.msk [vmem:[#allocation3 + $0x4] sm:$0x1] %vm281_vm3, %v717_v60  ;;  %1864 = vmatmul.mubr.msk.f32.vlgmr.msra.gmra.mrb[6].mxu0 %vm76_vm1, %v717_v60 }
0x1036   :  { %720 = vst.msk [vmem:[#allocation4 + $0x2] sm:$0x2] %vm283_vm4, %v717_v60  ;;  %1921 = vmatpush3.bf16.msra.mxu0 %v2254_v8  ;;  %1877 = vmatprep.mubr.msk.f32.mxu0 %vm2134_vm0, %v2135_v1  ;;  %v1050_v60 = vld [vmem:[%s2519_s6 + $0x8] sm:$0xff] }
0x1037   :  { %1925 = vmatprep.subr.bf16.mxu0 %v2133_v0 }
0x1108   :  { %v790_v62 = vpop.f32.mrb[6].mxu0 }
0x1109   :  { %v794_v63 = vadd.f32 %v790_v62, %v721_v61  ;;  %v1865_v2 = vpop.f32.mrb[7].mxu0  ;;  %v1926_v61 = vpack.c.bf16 %v1050_v60, %v1049_v58 }
0x110b   :  { %796 = vrot.lane.b32.xlu0 %v794_v63, %s2137_s2 }
0x117d   :  { %v797_v3 = vpop.permute.xlu0 %796 }
0x117e   :  { %v799_v4 = vsel %vm164_vm2, %v794_v63, %v797_v3 }
0x117f   :  { %1999 = vtanh.f32 %v799_v4  ;;  %v1775_v8 = vmul.f32 -1.442695, %v799_v4 }
0x1181   :  { %2001 = vpow2.f32 %v1775_v8  ;;  %v2141_v8 = vmov -10000.0  }
0x1189   :  { %v2000_v5 = vpop.eup %1999 }
0x118a   :  { %809 = vrot.lane.b32.xlu1 %v2000_v5, %s2138_s4  ;;  %v2401_v5 = vld [vmem:[%s2522_s9] sm:$0x7f] }
0x118b   :  { %v2002_v6 = vpop.eup %2001 }
0x118c   :  { %v803_v7 = vadd.f32 1.0, %v2002_v6  ;;  %v1214_v6 = vsel %vm1213_vm5, 0.0, %v2141_v8 }
0x118e   :  { %2003 = vrcp.f32 %v803_v7  ;;  %v1215_v7 = vadd.f32 %v1214_v6, %v2401_v5 }
0x1198   :  { %v2004_v0 = vpop.eup %2003 }
0x1199   :  { %v807_v11 = vmul.f32 %v2004_v0, %v708_v56  ;;  %v1052_v56 = vld [vmem:[%s2520_s7] sm:$0xff] }
0x119a   :  { %v1923_v59 = vpack.c.bf16 %v1053_v57, %v1052_v56 }
0x11fc   :  { %v810_v9 = vpop.permute.xlu1 %809 }
0x11fd   :  { %v812_v10 = vmul.f32 %v2004_v0, %v810_v9 }
0x11ff   :  { %814 = vrot.lane.b32.xlu0 %v812_v10, %s2136_s0 }
0x1271   :  { %v815_v12 = vpop.permute.xlu0 %814 }
0x1272   :  { %v817_v13 = vadd.f32 %v815_v12, %v807_v11 }
0x1274   :  { %2005 = vtanh.f32 %v817_v13 }
0x127e   :  { %v2006_v14 = vpop.eup %2005 }
0x127f   :  { %820 = vrot.lane.b32.xlu1 %v2006_v14, %s2139_s21 }
0x12f1   :  { %v821_v15 = vpop.permute.xlu1 %820 }
0x12f2   :  { %v823_v16 = vmul.f32 %v2004_v0, %v821_v15  ;;  %v1217_v0 = vsel %vm1216_vm6, %v1215_v7, -inf }
0x12f3   :  { %v1218_v9 = vrot.slane %v1217_v0, 4 }
0x12f4   :  { %825 = vrot.lane.b32.xlu0 %v823_v16, %s2140_s23 }
0x12f5   :  { %v1219_v10 = vmax.f32 %v1217_v0, %v1218_v9 }
0x12f7   :  { %v1220_v11 = vrot.slane %v1219_v10, 2 }
0x12f9   :  { %v1221_v12 = vmax.f32 %v1219_v10, %v1220_v11 }
0x1366   :  { %v826_v17 = vpop.permute.xlu0 %825 }
0x1367   :  { %828 = vst.msk [vmem:[#allocation3 + $0x5] sm:$0x1] %vm281_vm3, %v826_v17  ;;  %1871 = vmatmul.mubr.msk.f32.vlgmr.msra.gmra.mrb[6].mxu1 %vm76_vm1, %v826_v17 }
0x1368   :  { %829 = vst.msk [vmem:[#allocation4 + $0x1] sm:$0x2] %vm283_vm4, %v826_v17  ;;  %1884 = vmatprep.mubr.msk.f32.mxu1 %vm2134_vm0, %v2135_v1  ;;  %1924 = vmatpush3.bf16.msra.mxu1 %v1923_v59  ;;  %v1782_v17 = vld [vmem:[%s2521_s8] ss:$0 sm:$0xff] }
0x143a   :  { %v899_v19 = vpop.f32.mrb[6].mxu1 }
0x143b   :  { %v903_v20 = vadd.f32 %v899_v19, %v830_v18  ;;  %v1872_v23 = vpop.f32.mrb[7].mxu1 }
0x143d   :  { %905 = vrot.lane.b32.xlu1 %v903_v20, %s2137_s2 }
0x14af   :  { %v906_v24 = vpop.permute.xlu1 %905 }
0x14b0   :  { %v908_v25 = vsel %vm164_vm2, %v903_v20, %v906_v24  ;;  %v2409_v24 = vsub.s32 0, %v2278_v22 }
0x14b1   :  { %2007 = vtanh.f32 %v908_v25  ;;  %v1777_v27 = vmul.f32 -1.442695, %v908_v25 }
0x14b3   :  { %2009 = vpow2.f32 %v1777_v27 }
0x14bb   :  { %v2008_v26 = vpop.eup %2007 }
0x14bc   :  { %918 = vrot.lane.b32.xlu0 %v2008_v26, %s2138_s4 }
0x14bd   :  { %v2010_v28 = vpop.eup %2009 }
0x14be   :  { %v912_v29 = vadd.f32 1.0, %v2010_v28 }
0x14c0   :  { %2011 = vrcp.f32 %v912_v29 }
0x14ca   :  { %v2012_v30 = vpop.eup %2011 }
0x14cb   :  { %v916_v33 = vmul.f32 %v2012_v30, %v817_v13  ;;  %v1222_v13 = vrot.slane %v1221_v12, 1 }
0x14cd   :  { %v1223_v14 = vmax.f32 %v1221_v12, %v1222_v13 }
0x152e   :  { %v919_v31 = vpop.permute.xlu0 %918 }
0x152f   :  { %v921_v32 = vmul.f32 %v2012_v30, %v919_v31 }
0x1531   :  { %923 = vrot.lane.b32.xlu1 %v921_v32, %s2136_s0 }
0x15a3   :  { %v924_v34 = vpop.permute.xlu1 %923 }
0x15a4   :  { %v926_v35 = vadd.f32 %v924_v34, %v916_v33 }
0x15a6   :  { %2013 = vtanh.f32 %v926_v35 }
0x15b0   :  { %v2014_v36 = vpop.eup %2013 }
0x15b1   :  { %929 = vrot.lane.b32.xlu0 %v2014_v36, %s2139_s21 }
0x1623   :  { %v930_v37 = vpop.permute.xlu0 %929 }
0x1624   :  { %v932_v38 = vmul.f32 %v2012_v30, %v930_v37 }
0x1626   :  { %934 = vrot.lane.b32.xlu1 %v932_v38, %s2140_s23 }
0x1698   :  { %v935_v39 = vpop.permute.xlu1 %934 }
0x1699   :  { %937 = vst.msk [vmem:[#allocation3 + $0x6] sm:$0x1] %vm281_vm3, %v935_v39  ;;  %1878 = vmatmul.mubr.msk.f32.vlgmr.msra.gmra.mrb[8].mxu0 %vm76_vm1, %v935_v39 }
0x169a   :  { %938 = vst.msk [vmem:[#allocation4] sm:$0x2] %vm283_vm4, %v935_v39  ;;  %1891 = vmatprep.mubr.msk.f32.mxu0 %vm2134_vm0, %v2135_v1  ;;  %1927 = vmatpush3.bf16.msra.mxu0 %v1926_v61 }
0x176c   :  { %v1008_v41 = vpop.f32.mrb[8].mxu0 }
0x176d   :  { %v1012_v42 = vadd.f32 %v1008_v41, %v939_v40  ;;  %v1879_v43 = vpop.f32.mrb[9].mxu0 }
0x176f   :  { %1014 = vrot.lane.b32.xlu0 %v1012_v42, %s2137_s2  ;;  %s2067_s2 = scalar_lea.vmem %s1725_s19, 16 }
0x1770   :  { %p2068_p2 = scmp.ne.s32.totalorder %s1725_s19, %s2067_s2 }
0x17e1   :  { %v1015_v44 = vpop.permute.xlu0 %1014 }
0x17e2   :  { %v1017_v45 = vsel %vm164_vm2, %v1012_v42, %v1015_v44 }
0x17e3   :  { %2015 = vtanh.f32 %v1017_v45  ;;  %v1779_v47 = vmul.f32 -1.442695, %v1017_v45 }
0x17e5   :  { %2017 = vpow2.f32 %v1779_v47 }
0x17ed   :  { %v2016_v46 = vpop.eup %2015 }
0x17ee   :  { %1027 = vrot.lane.b32.xlu1 %v2016_v46, %s2138_s4  ;;  %s2071_s4 = scalar_lea.vmem %s1725_s19, 32 }
0x17ef   :  { %v2018_v48 = vpop.eup %2017  ;;  %p2073_p4 = scmp.lt.s32.totalorder %s2071_s4, %s2067_s2 }
0x17f0   :  { %v1021_v49 = vadd.f32 1.0, %v2018_v48 }
0x17f1   :  { %p2074_p5 = por %p2073_p4, %p2072_p3 }
0x17f2   :  { %2019 = vrcp.f32 %v1021_v49 }
0x17f3   :  { %p2075_p6 = pnand %p2074_p5, %p2068_p2 }
0x17fc   :  { %v2020_v1 = vpop.eup %2019 }
0x17fd   :  { %v1025_v52 = vmul.f32 %v2020_v1, %v926_v35 }
0x1860   :  { %v1028_v50 = vpop.permute.xlu1 %1027 }
0x1861   :  { %v1030_v51 = vmul.f32 %v2020_v1, %v1028_v50 }
0x1863   :  { %1032 = vrot.lane.b32.xlu0 %v1030_v51, %s2136_s0  ;;  %s1742_s0 = sshll.u32 %s2144_s20, 4  ;;  %s1743_s0 = int_to_ptr.vmem [resolvable:$true] %s1742_s0 }
0x18d5   :  { %v1033_v53 = vpop.permute.xlu0 %1032 }
0x18d6   :  { %v1035_v54 = vadd.f32 %v1033_v53, %v1025_v52 }
0x18d8   :  { %2021 = vtanh.f32 %v1035_v54 }
0x18e2   :  { %v2022_v55 = vpop.eup %2021 }
0x18e3   :  { %1038 = vrot.lane.b32.xlu1 %v2022_v55, %s2139_s21 }
0x1955   :  { %v1039_v62 = vpop.permute.xlu1 %1038 }
0x1956   :  { %v1041_v63 = vmul.f32 %v2020_v1, %v1039_v62 }
0x1958   :  { %1043 = vrot.lane.b32.xlu0 %v1041_v63, %s2140_s23 }
0x19ca   :  { %v1044_v2 = vpop.permute.xlu0 %1043 }
0x19cb   :  { %1046 = vst.msk [vmem:[#allocation3 + $0x7] sm:$0x1] %vm281_vm3, %v1044_v2 }
0x19cc   :  { %1047 = vst.msk [vmem:[#allocation4 - $0x1] sm:$0x2] %vm283_vm4, %v1044_v2 }
0x19d2   :  { %v1048_v4 = vld [vmem:[#allocation3] sm:$0xff] }
0x19d3   :  { %v1051_v3 = vld [vmem:[#allocation4] sm:$0xff]  ;;  %1892 = vmatmul.mubr.msk.f32.vlgmr.msra.gmra.mrb[10].mxu0 %vm76_vm1, %v1048_v4 }
0x19d4   :  { %1885 = vmatmul.mubr.msk.f32.vlgmr.msra.gmra.mrb[8].mxu1 %vm76_vm1, %v1051_v3 }
0x1aa6   :  { %v1196_v16 = vpop.f32.mrb[10].mxu0 }
0x1aa7   :  { %v1123_v15 = vpop.f32.mrb[8].mxu1  ;;  %v1893_v20 = vpop.f32.mrb[11].mxu0 }
0x1aa8   :  { %v1197_v18 = vadd.f32 %v1196_v16, %v1123_v15  ;;  %v1886_v19 = vpop.f32.mrb[9].mxu1 }
0x1aaa   :  { %v1207_v23 = vadd.f32 %v1782_v17, %v1197_v18 }
0x1aac   :  { %1209 = vst.msk [vmem:[#allocation14] sm:$0xff] %vm1208_vm8, %v1207_v23 }
0x1ab3   :  { %v1238_v25 = vld [vmem:[#allocation14] sm:$0x1]  ;;  %v1268_v37 = vld [vmem:[#allocation14 + $0x1] sm:$0x1]  ;;  %v1298_v56 = vld [vmem:[#allocation14 + $0x2] sm:$0x1] }
0x1ab4   :  { %v1239_v26 = vadd.f32 %v1238_v25, %v1223_v14  ;;  %v1328_v14 = vld [vmem:[#allocation14 + $0x3] sm:$0x1] }
0x1ab6   :  { %v1243_v27 = vrot.slane %v1239_v26, %v2409_v24 }
0x1ab8   :  { %1245 = vbcast.lane.b32.xlu1 %v1243_v27, 256 }
0x1b2a   :  { %v1246_v28 = vpop.permute.xlu1 %1245 }
0x1b2b   :  { %v1247_v29 = vadd.f32 %v1246_v28, %v2401_v5 }
0x1b2d   :  { %v1248_v30 = vsel %vm1216_vm6, %v1247_v29, -inf }
0x1b2e   :  { %v1249_v31 = vrot.slane %v1248_v30, 4 }
0x1b30   :  { %v1250_v32 = vmax.f32 %v1248_v30, %v1249_v31 }
0x1b32   :  { %v1251_v33 = vrot.slane %v1250_v32, 2 }
0x1b34   :  { %v1252_v34 = vmax.f32 %v1250_v32, %v1251_v33 }
0x1b36   :  { %v1253_v35 = vrot.slane %v1252_v34, 1 }
0x1b38   :  { %v1254_v36 = vmax.f32 %v1252_v34, %v1253_v35 }
0x1b3a   :  { %vm1255_vm9 = vcmp.eq.f32.partialorder %v1247_v29, %v1254_v36  ;;  %v1269_v38 = vadd.f32 %v1268_v37, %v1254_v36  ;;  %v1358_v37 = vld [vmem:[#allocation14 + $0x4] sm:$0x1] }
0x1b3b   :  { %v1256_v39 = vsel %vm1255_vm9, %v2278_v22, 7 }
0x1b3c   :  { %v1257_v40 = vsel %vm1216_vm6, %v1256_v39, 2147483647  ;;  %v1273_v41 = vrot.slane %v1269_v38, %v2409_v24 }
0x1b3d   :  { %v1258_v42 = vrot.slane %v1257_v40, 4 }
0x1b3e   :  { %1275 = vbcast.lane.b32.xlu0 %v1273_v41, 256 }
0x1b3f   :  { %vm1259_vm10 = vcmp.lt.s32.totalorder %v1257_v40, %v1258_v42 }
0x1b40   :  { %v1260_v43 = vsel %vm1259_vm10, %v1257_v40, %v1258_v42 }
0x1b41   :  { %v1261_v44 = vrot.slane %v1260_v43, 2 }
0x1b43   :  { %vm1262_vm11 = vcmp.lt.s32.totalorder %v1260_v43, %v1261_v44 }
0x1b44   :  { %v1263_v45 = vsel %vm1262_vm11, %v1260_v43, %v1261_v44 }
0x1b45   :  { %v1264_v46 = vrot.slane %v1263_v45, 1 }
0x1b47   :  { %vm1265_vm12 = vcmp.lt.s32.totalorder %v1263_v45, %v1264_v46 }
0x1b48   :  { %v1266_v47 = vsel %vm1265_vm12, %v1263_v45, %v1264_v46 }
0x1b49   :  { %1267 = vst.msk [vmem:[#allocation5 + $0x1] sm:$0x1] %vm1236_vm7, %v1266_v47 }
0x1bb0   :  { %v1276_v48 = vpop.permute.xlu0 %1275 }
0x1bb1   :  { %v1277_v49 = vadd.f32 %v1276_v48, %v2401_v5 }
0x1bb3   :  { %v1278_v1 = vsel %vm1216_vm6, %v1277_v49, -inf }
0x1bb4   :  { %v1279_v50 = vrot.slane %v1278_v1, 4 }
0x1bb6   :  { %v1280_v51 = vmax.f32 %v1278_v1, %v1279_v50 }
0x1bb8   :  { %v1281_v52 = vrot.slane %v1280_v51, 2 }
0x1bba   :  { %v1282_v53 = vmax.f32 %v1280_v51, %v1281_v52 }
0x1bbc   :  { %v1283_v54 = vrot.slane %v1282_v53, 1 }
0x1bbe   :  { %v1284_v55 = vmax.f32 %v1282_v53, %v1283_v54 }
0x1bc0   :  { %vm1285_vm13 = vcmp.eq.f32.partialorder %v1277_v49, %v1284_v55  ;;  %v1299_v57 = vadd.f32 %v1298_v56, %v1284_v55  ;;  %v1388_v56 = vld [vmem:[#allocation14 + $0x5] sm:$0x1] }
0x1bc1   :  { %v1286_v58 = vsel %vm1285_vm13, %v2278_v22, 7 }
0x1bc2   :  { %v1287_v59 = vsel %vm1216_vm6, %v1286_v58, 2147483647  ;;  %v1303_v60 = vrot.slane %v1299_v57, %v2409_v24 }
0x1bc3   :  { %v1288_v61 = vrot.slane %v1287_v59, 4 }
0x1bc4   :  { %1305 = vbcast.lane.b32.xlu1 %v1303_v60, 256 }
0x1bc5   :  { %vm1289_vm14 = vcmp.lt.s32.totalorder %v1287_v59, %v1288_v61 }
0x1bc6   :  { %v1290_v62 = vsel %vm1289_vm14, %v1287_v59, %v1288_v61 }
0x1bc7   :  { %v1291_v63 = vrot.slane %v1290_v62, 2 }
0x1bc9   :  { %vm1292_vm15 = vcmp.lt.s32.totalorder %v1290_v62, %v1291_v63 }
0x1bca   :  { %v1293_v2 = vsel %vm1292_vm15, %v1290_v62, %v1291_v63 }
0x1bcb   :  { %v1294_v3 = vrot.slane %v1293_v2, 1 }
0x1bcd   :  { %vm1295_vm0 = vcmp.lt.s32.totalorder %v1293_v2, %v1294_v3 }
0x1bce   :  { %v1296_v4 = vsel %vm1295_vm0, %v1293_v2, %v1294_v3 }
0x1bcf   :  { %1297 = vst.msk [vmem:[#allocation5 + $0x2] sm:$0x1] %vm1236_vm7, %v1296_v4 }
0x1c36   :  { %v1306_v8 = vpop.permute.xlu1 %1305 }
0x1c37   :  { %v1307_v6 = vadd.f32 %v1306_v8, %v2401_v5 }
0x1c39   :  { %v1308_v7 = vsel %vm1216_vm6, %v1307_v6, -inf }
0x1c3a   :  { %v1309_v0 = vrot.slane %v1308_v7, 4 }
0x1c3c   :  { %v1310_v9 = vmax.f32 %v1308_v7, %v1309_v0 }
0x1c3e   :  { %v1311_v10 = vrot.slane %v1310_v9, 2 }
0x1c40   :  { %v1312_v11 = vmax.f32 %v1310_v9, %v1311_v10 }
0x1c42   :  { %v1313_v12 = vrot.slane %v1312_v11, 1 }
0x1c44   :  { %v1314_v13 = vmax.f32 %v1312_v11, %v1313_v12 }
0x1c46   :  { %vm1315_vm1 = vcmp.eq.f32.partialorder %v1307_v6, %v1314_v13  ;;  %v1329_v15 = vadd.f32 %v1328_v14, %v1314_v13  ;;  %v1418_v14 = vld [vmem:[#allocation14 + $0x6] sm:$0x1] }
0x1c47   :  { %v1316_v16 = vsel %vm1315_vm1, %v2278_v22, 7 }
0x1c48   :  { %v1317_v17 = vsel %vm1216_vm6, %v1316_v16, 2147483647  ;;  %v1333_v18 = vrot.slane %v1329_v15, %v2409_v24 }
0x1c49   :  { %v1318_v19 = vrot.slane %v1317_v17, 4 }
0x1c4a   :  { %1335 = vbcast.lane.b32.xlu0 %v1333_v18, 256 }
0x1c4b   :  { %vm1319_vm2 = vcmp.lt.s32.totalorder %v1317_v17, %v1318_v19 }
0x1c4c   :  { %v1320_v20 = vsel %vm1319_vm2, %v1317_v17, %v1318_v19 }
0x1c4d   :  { %v1321_v23 = vrot.slane %v1320_v20, 2 }
0x1c4f   :  { %vm1322_vm3 = vcmp.lt.s32.totalorder %v1320_v20, %v1321_v23 }
0x1c50   :  { %v1323_v25 = vsel %vm1322_vm3, %v1320_v20, %v1321_v23 }
0x1c51   :  { %v1324_v26 = vrot.slane %v1323_v25, 1 }
0x1c53   :  { %vm1325_vm4 = vcmp.lt.s32.totalorder %v1323_v25, %v1324_v26 }
0x1c54   :  { %v1326_v27 = vsel %vm1325_vm4, %v1323_v25, %v1324_v26 }
0x1c55   :  { %1327 = vst.msk [vmem:[#allocation5 + $0x3] sm:$0x1] %vm1236_vm7, %v1326_v27 }
0x1cbc   :  { %v1336_v28 = vpop.permute.xlu0 %1335 }
0x1cbd   :  { %v1337_v29 = vadd.f32 %v1336_v28, %v2401_v5 }
0x1cbf   :  { %v1338_v30 = vsel %vm1216_vm6, %v1337_v29, -inf }
0x1cc0   :  { %v1339_v31 = vrot.slane %v1338_v30, 4 }
0x1cc2   :  { %v1340_v32 = vmax.f32 %v1338_v30, %v1339_v31 }
0x1cc4   :  { %v1341_v33 = vrot.slane %v1340_v32, 2 }
0x1cc6   :  { %v1342_v34 = vmax.f32 %v1340_v32, %v1341_v33 }
0x1cc8   :  { %v1343_v35 = vrot.slane %v1342_v34, 1 }
0x1cca   :  { %v1344_v36 = vmax.f32 %v1342_v34, %v1343_v35 }
0x1ccc   :  { %vm1345_vm5 = vcmp.eq.f32.partialorder %v1337_v29, %v1344_v36  ;;  %v1359_v38 = vadd.f32 %v1358_v37, %v1344_v36  ;;  %v1448_v37 = vld [vmem:[#allocation14 + $0x7] sm:$0x1] }
0x1ccd   :  { %v1346_v39 = vsel %vm1345_vm5, %v2278_v22, 7 }
0x1cce   :  { %v1347_v40 = vsel %vm1216_vm6, %v1346_v39, 2147483647  ;;  %v1363_v41 = vrot.slane %v1359_v38, %v2409_v24 }
0x1ccf   :  { %v1348_v42 = vrot.slane %v1347_v40, 4 }
0x1cd0   :  { %1365 = vbcast.lane.b32.xlu1 %v1363_v41, 256 }
0x1cd1   :  { %vm1349_vm8 = vcmp.lt.s32.totalorder %v1347_v40, %v1348_v42 }
0x1cd2   :  { %v1350_v43 = vsel %vm1349_vm8, %v1347_v40, %v1348_v42 }
0x1cd3   :  { %v1351_v44 = vrot.slane %v1350_v43, 2 }
0x1cd5   :  { %vm1352_vm9 = vcmp.lt.s32.totalorder %v1350_v43, %v1351_v44 }
0x1cd6   :  { %v1353_v45 = vsel %vm1352_vm9, %v1350_v43, %v1351_v44  ;;  %vm1458_vm9 = vcmask 55344  }
0x1cd7   :  { %v1354_v46 = vrot.slane %v1353_v45, 1 }
0x1cd9   :  { %vm1355_vm10 = vcmp.lt.s32.totalorder %v1353_v45, %v1354_v46 }
0x1cda   :  { %v1356_v47 = vsel %vm1355_vm10, %v1353_v45, %v1354_v46 }
0x1cdb   :  { %1357 = vst.msk [vmem:[#allocation5 + $0x4] sm:$0x1] %vm1236_vm7, %v1356_v47 }
0x1d42   :  { %v1366_v48 = vpop.permute.xlu1 %1365 }
0x1d43   :  { %v1367_v49 = vadd.f32 %v1366_v48, %v2401_v5 }
0x1d45   :  { %v1368_v1 = vsel %vm1216_vm6, %v1367_v49, -inf }
0x1d46   :  { %v1369_v50 = vrot.slane %v1368_v1, 4 }
0x1d48   :  { %v1370_v51 = vmax.f32 %v1368_v1, %v1369_v50 }
0x1d4a   :  { %v1371_v52 = vrot.slane %v1370_v51, 2 }
0x1d4c   :  { %v1372_v53 = vmax.f32 %v1370_v51, %v1371_v52 }
0x1d4e   :  { %v1373_v54 = vrot.slane %v1372_v53, 1 }
0x1d50   :  { %v1374_v55 = vmax.f32 %v1372_v53, %v1373_v54 }
0x1d52   :  { %vm1375_vm11 = vcmp.eq.f32.partialorder %v1367_v49, %v1374_v55  ;;  %v1389_v57 = vadd.f32 %v1388_v56, %v1374_v55 }
0x1d53   :  { %v1376_v58 = vsel %vm1375_vm11, %v2278_v22, 7 }
0x1d54   :  { %v1377_v59 = vsel %vm1216_vm6, %v1376_v58, 2147483647  ;;  %v1393_v60 = vrot.slane %v1389_v57, %v2409_v24 }
0x1d55   :  { %v1378_v61 = vrot.slane %v1377_v59, 4 }
0x1d56   :  { %1395 = vbcast.lane.b32.xlu0 %v1393_v60, 256 }
0x1d57   :  { %vm1379_vm12 = vcmp.lt.s32.totalorder %v1377_v59, %v1378_v61 }
0x1d58   :  { %v1380_v62 = vsel %vm1379_vm12, %v1377_v59, %v1378_v61 }
0x1d59   :  { %v1381_v63 = vrot.slane %v1380_v62, 2 }
0x1d5b   :  { %vm1382_vm13 = vcmp.lt.s32.totalorder %v1380_v62, %v1381_v63 }
0x1d5c   :  { %v1383_v2 = vsel %vm1382_vm13, %v1380_v62, %v1381_v63 }
0x1d5d   :  { %v1384_v3 = vrot.slane %v1383_v2, 1 }
0x1d5f   :  { %vm1385_vm14 = vcmp.lt.s32.totalorder %v1383_v2, %v1384_v3 }
0x1d60   :  { %v1386_v4 = vsel %vm1385_vm14, %v1383_v2, %v1384_v3 }
0x1d61   :  { %1387 = vst.msk [vmem:[#allocation5 + $0x5] sm:$0x1] %vm1236_vm7, %v1386_v4 }
0x1dc8   :  { %v1396_v8 = vpop.permute.xlu0 %1395 }
0x1dc9   :  { %v1397_v6 = vadd.f32 %v1396_v8, %v2401_v5 }
0x1dcb   :  { %v1398_v7 = vsel %vm1216_vm6, %v1397_v6, -inf }
0x1dcc   :  { %v1399_v0 = vrot.slane %v1398_v7, 4 }
0x1dce   :  { %v1400_v9 = vmax.f32 %v1398_v7, %v1399_v0 }
0x1dd0   :  { %v1401_v10 = vrot.slane %v1400_v9, 2 }
0x1dd2   :  { %v1402_v11 = vmax.f32 %v1400_v9, %v1401_v10  ;;  %v2460_v10 = vand.u32 127, %v162_v21 }
0x1dd4   :  { %v1403_v12 = vrot.slane %v1402_v11, 1 }
0x1dd6   :  { %v1404_v13 = vmax.f32 %v1402_v11, %v1403_v12 }
0x1dd8   :  { %vm1405_vm15 = vcmp.eq.f32.partialorder %v1397_v6, %v1404_v13  ;;  %v1419_v15 = vadd.f32 %v1418_v14, %v1404_v13 }
0x1dd9   :  { %v1406_v16 = vsel %vm1405_vm15, %v2278_v22, 7 }
0x1dda   :  { %v1407_v17 = vsel %vm1216_vm6, %v1406_v16, 2147483647  ;;  %v1423_v18 = vrot.slane %v1419_v15, %v2409_v24 }
0x1ddb   :  { %v1408_v19 = vrot.slane %v1407_v17, 4 }
0x1ddc   :  { %1425 = vbcast.lane.b32.xlu1 %v1423_v18, 256 }
0x1ddd   :  { %vm1409_vm0 = vcmp.lt.s32.totalorder %v1407_v17, %v1408_v19 }
0x1dde   :  { %v1410_v20 = vsel %vm1409_vm0, %v1407_v17, %v1408_v19 }
0x1ddf   :  { %v1411_v23 = vrot.slane %v1410_v20, 2 }
0x1de1   :  { %vm1412_vm1 = vcmp.lt.s32.totalorder %v1410_v20, %v1411_v23 }
0x1de2   :  { %v1413_v25 = vsel %vm1412_vm1, %v1410_v20, %v1411_v23 }
0x1de3   :  { %v1414_v26 = vrot.slane %v1413_v25, 1 }
0x1de5   :  { %vm1415_vm2 = vcmp.lt.s32.totalorder %v1413_v25, %v1414_v26 }
0x1de6   :  { %v1416_v27 = vsel %vm1415_vm2, %v1413_v25, %v1414_v26 }
0x1de7   :  { %1417 = vst.msk [vmem:[#allocation5 + $0x6] sm:$0x1] %vm1236_vm7, %v1416_v27 }
0x1e4e   :  { %v1426_v28 = vpop.permute.xlu1 %1425 }
0x1e4f   :  { %v1427_v29 = vadd.f32 %v1426_v28, %v2401_v5 }
0x1e51   :  { %v1428_v30 = vsel %vm1216_vm6, %v1427_v29, -inf }
0x1e52   :  { %v1429_v31 = vrot.slane %v1428_v30, 4 }
0x1e54   :  { %v1430_v32 = vmax.f32 %v1428_v30, %v1429_v31 }
0x1e56   :  { %v1431_v33 = vrot.slane %v1430_v32, 2 }
0x1e58   :  { %v1432_v34 = vmax.f32 %v1430_v32, %v1431_v33 }
0x1e5a   :  { %v1433_v35 = vrot.slane %v1432_v34, 1 }
0x1e5c   :  { %v1434_v36 = vmax.f32 %v1432_v34, %v1433_v35  ;;  %v1532_v35 = vld [vmem:[#allocation5 + $0x6] sm:$0x1] }
0x1e5e   :  { %vm1435_vm3 = vcmp.eq.f32.partialorder %v1427_v29, %v1434_v36  ;;  %v1449_v38 = vadd.f32 %v1448_v37, %v1434_v36 }
0x1e5f   :  { %v1436_v39 = vsel %vm1435_vm3, %v2278_v22, 7 }
0x1e60   :  { %v1437_v40 = vsel %vm1216_vm6, %v1436_v39, 2147483647  ;;  %v1453_v41 = vrot.slane %v1449_v38, %v2409_v24 }
0x1e61   :  { %v1438_v42 = vrot.slane %v1437_v40, 4 }
0x1e62   :  { %1455 = vbcast.lane.b32.xlu0 %v1453_v41, 256 }
0x1e63   :  { %vm1439_vm4 = vcmp.lt.s32.totalorder %v1437_v40, %v1438_v42 }
0x1e64   :  { %v1440_v43 = vsel %vm1439_vm4, %v1437_v40, %v1438_v42 }
0x1e65   :  { %v1441_v44 = vrot.slane %v1440_v43, 2 }
0x1e67   :  { %vm1442_vm5 = vcmp.lt.s32.totalorder %v1440_v43, %v1441_v44 }
0x1e68   :  { %v1443_v45 = vsel %vm1442_vm5, %v1440_v43, %v1441_v44 }
0x1e69   :  { %v1444_v46 = vrot.slane %v1443_v45, 1 }
0x1e6b   :  { %vm1445_vm8 = vcmp.lt.s32.totalorder %v1443_v45, %v1444_v46 }
0x1e6c   :  { %v1446_v47 = vsel %vm1445_vm8, %v1443_v45, %v1444_v46 }
0x1e6d   :  { %1447 = vst.msk [vmem:[#allocation5 + $0x7] sm:$0x1] %vm1236_vm7, %v1446_v47 }
0x1e74   :  { %v1501_v12 = vld [vmem:[#allocation5 + $0x7] sm:$0x1] }
0x1ed4   :  { %v1456_v48 = vpop.permute.xlu0 %1455 }
0x1ed5   :  { %v1457_v49 = vadd.f32 %v1456_v48, %v2401_v5 }
0x1ed7   :  { %v1459_v1 = vsel %vm1458_vm9, %v1457_v49, -inf }
0x1ed8   :  { %v1460_v50 = vrot.slane %v1459_v1, 4 }
0x1eda   :  { %v1461_v51 = vmax.f32 %v1459_v1, %v1460_v50 }
0x1edc   :  { %v1462_v24 = vrot.slane %v1461_v51, 2 }
0x1ede   :  { %v1463_v52 = vmax.f32 %v1461_v51, %v1462_v24 }
0x1ee0   :  { %v1464_v53 = vrot.slane %v1463_v52, 1 }
0x1ee2   :  { %v2455_v54 = vmax.f32 %v1463_v52, %v1464_v53 }
0x1ee4   :  { %vm1472_vm6 = vcmp.eq.f32.partialorder %v1457_v49, %v2455_v54 }
0x1ee5   :  { %v1473_v55 = vsel %vm1472_vm6, %v2278_v22, 7 }
0x1ee6   :  { %v1474_v56 = vsel %vm1458_vm9, %v1473_v55, 2147483647  ;;  %v1563_v55 = vld [vmem:[#allocation5 + $0x5] sm:$0x1] }
0x1ee7   :  { %v1476_v57 = vshra.s32 %v1474_v56, 16  ;;  %v1475_v59 = vand.u32 65535, %v1474_v56 }
0x1ee9   :  { %v1478_v58 = vcvt.s32.f32 %v1476_v57  ;;  %v1477_v61 = vcvt.s32.f32 %v1475_v59 }
0x1eeb   :  { %1479 = vmin.xlane.f32.xlu1 %v1478_v58 }
0x1f78   :  { %v1480_v60 = vpop.xlane.xlu1 %1479 }
0x1f79   :  { %vm1481_vm10 = vcmp.eq.f32.partialorder %v1478_v58, %v1480_v60  ;;  %v1486_v62 = vcvt.f32.s32 %v1480_v60 }
0x1f7a   :  { %v1482_v5 = vsel %vm1481_vm10, %v1477_v61, inf }
0x1f7b   :  { %1483 = vmin.xlane.f32.xlu0 %v1482_v5  ;;  %v1487_v2 = vshll.u32 %v1486_v62, 16 }
0x2008   :  { %v1484_v63 = vpop.xlane.xlu0 %1483 }
0x2009   :  { %v1485_v3 = vcvt.f32.s32 %v1484_v63 }
0x200b   :  { %v1488_v4 = vadd.s32 %v1487_v2, %v1485_v3 }
0x200d   :  { %v1489_v8 = vrot.slane %v1488_v4, 4 }
0x200f   :  { %vm1490_vm11 = vcmp.lt.s32.totalorder %v1488_v4, %v1489_v8 }
0x2010   :  { %v1491_v6 = vsel %vm1490_vm11, %v1488_v4, %v1489_v8 }
0x2011   :  { %v1492_v7 = vrot.slane %v1491_v6, 2 }
0x2013   :  { %vm1493_vm12 = vcmp.lt.s32.totalorder %v1491_v6, %v1492_v7 }
0x2014   :  { %v1494_v22 = vsel %vm1493_vm12, %v1491_v6, %v1492_v7 }
0x2015   :  { %v1495_v0 = vrot.slane %v1494_v22, 1 }
0x2017   :  { %vm1496_vm13 = vcmp.lt.s32.totalorder %v1494_v22, %v1495_v0 }
0x2018   :  { %v1497_v9 = vsel %vm1496_vm13, %v1494_v22, %v1495_v0 }
0x2019   :  { %1928 = vpush %v1497_v9 }
0x204a   :  { %s1929_s8 = spop %1928 }
0x204b   :  { %1500 = sst [smem:[#allocation13 + $0x7]] %s1929_s8  ;;  %v1502_v11 = vstv %s1929_s8 }
0x204c   :  { %vm1503_vm14 = vcmp.eq.s32.totalorder %v2460_v10, %v1502_v11 }
0x204d   :  { %v1504_v13 = vsel %vm1503_vm14, %v1501_v12, 7 }
0x204e   :  { %v1505_v14 = vsel %vm1236_vm7, %v1504_v13, 2147483647  ;;  %v1594_v13 = vld [vmem:[#allocation5 + $0x4] sm:$0x1] }
0x204f   :  { %v1507_v15 = vshra.s32 %v1505_v14, 16  ;;  %v1506_v17 = vand.u32 65535, %v1505_v14 }
0x2051   :  { %v1509_v16 = vcvt.s32.f32 %v1507_v15  ;;  %v1508_v19 = vcvt.s32.f32 %v1506_v17 }
0x2053   :  { %1510 = vmin.xlane.f32.xlu0 %v1509_v16 }
0x20e0   :  { %v1511_v18 = vpop.xlane.xlu0 %1510 }
0x20e1   :  { %vm1512_vm15 = vcmp.eq.f32.partialorder %v1509_v16, %v1511_v18  ;;  %v1517_v21 = vcvt.f32.s32 %v1511_v18 }
0x20e2   :  { %v1513_v20 = vsel %vm1512_vm15, %v1508_v19, inf }
0x20e3   :  { %1514 = vmin.xlane.f32.xlu1 %v1513_v20  ;;  %v1518_v25 = vshll.u32 %v1517_v21, 16 }
0x2170   :  { %v1515_v23 = vpop.xlane.xlu1 %1514 }
0x2171   :  { %v1516_v26 = vcvt.f32.s32 %v1515_v23 }
0x2173   :  { %v1519_v27 = vadd.s32 %v1518_v25, %v1516_v26 }
0x2175   :  { %v1520_v28 = vrot.slane %v1519_v27, 4 }
0x2177   :  { %vm1521_vm0 = vcmp.lt.s32.totalorder %v1519_v27, %v1520_v28 }
0x2178   :  { %v1522_v29 = vsel %vm1521_vm0, %v1519_v27, %v1520_v28 }
0x2179   :  { %v1523_v30 = vrot.slane %v1522_v29, 2 }
0x217b   :  { %vm1524_vm1 = vcmp.lt.s32.totalorder %v1522_v29, %v1523_v30 }
0x217c   :  { %v1525_v31 = vsel %vm1524_vm1, %v1522_v29, %v1523_v30 }
0x217d   :  { %v1526_v32 = vrot.slane %v1525_v31, 1 }
0x217f   :  { %vm1527_vm2 = vcmp.lt.s32.totalorder %v1525_v31, %v1526_v32 }
0x2180   :  { %v1528_v33 = vsel %vm1527_vm2, %v1525_v31, %v1526_v32 }
0x2181   :  { %1930 = vpush %v1528_v33 }
0x21b2   :  { %s1931_s9 = spop %1930 }
0x21b3   :  { %1531 = sst [smem:[#allocation13 + $0x6]] %s1931_s9  ;;  %v1533_v34 = vstv %s1931_s9 }
0x21b4   :  { %vm1534_vm3 = vcmp.eq.s32.totalorder %v2460_v10, %v1533_v34 }
0x21b5   :  { %v1535_v36 = vsel %vm1534_vm3, %v1532_v35, 7 }
0x21b6   :  { %v1536_v37 = vsel %vm1236_vm7, %v1535_v36, 2147483647  ;;  %v1625_v36 = vld [vmem:[#allocation5 + $0x3] sm:$0x1] }
0x21b7   :  { %v1538_v38 = vshra.s32 %v1536_v37, 16  ;;  %v1537_v40 = vand.u32 65535, %v1536_v37 }
0x21b9   :  { %v1540_v39 = vcvt.s32.f32 %v1538_v38  ;;  %v1539_v42 = vcvt.s32.f32 %v1537_v40 }
0x21bb   :  { %1541 = vmin.xlane.f32.xlu0 %v1540_v39 }
0x2248   :  { %v1542_v41 = vpop.xlane.xlu0 %1541 }
0x2249   :  { %vm1543_vm4 = vcmp.eq.f32.partialorder %v1540_v39, %v1542_v41  ;;  %v1548_v44 = vcvt.f32.s32 %v1542_v41 }
0x224a   :  { %v1544_v43 = vsel %vm1543_vm4, %v1539_v42, inf }
0x224b   :  { %1545 = vmin.xlane.f32.xlu1 %v1544_v43  ;;  %v1549_v46 = vshll.u32 %v1548_v44, 16 }
0x22d8   :  { %v1546_v45 = vpop.xlane.xlu1 %1545 }
0x22d9   :  { %v1547_v47 = vcvt.f32.s32 %v1546_v45 }
0x22db   :  { %v1550_v48 = vadd.s32 %v1549_v46, %v1547_v47 }
0x22dd   :  { %v1551_v49 = vrot.slane %v1550_v48, 4 }
0x22df   :  { %vm1552_vm5 = vcmp.lt.s32.totalorder %v1550_v48, %v1551_v49 }
0x22e0   :  { %v1553_v1 = vsel %vm1552_vm5, %v1550_v48, %v1551_v49 }
0x22e1   :  { %v1554_v50 = vrot.slane %v1553_v1, 2 }
0x22e3   :  { %vm1555_vm8 = vcmp.lt.s32.totalorder %v1553_v1, %v1554_v50 }
0x22e4   :  { %v1556_v51 = vsel %vm1555_vm8, %v1553_v1, %v1554_v50 }
0x22e5   :  { %v1557_v24 = vrot.slane %v1556_v51, 1 }
0x22e7   :  { %vm1558_vm9 = vcmp.lt.s32.totalorder %v1556_v51, %v1557_v24 }
0x22e8   :  { %v1559_v52 = vsel %vm1558_vm9, %v1556_v51, %v1557_v24 }
0x22e9   :  { %1932 = vpush %v1559_v52 }
0x231a   :  { %s1933_s24 = spop %1932 }
0x231b   :  { %1562 = sst [smem:[#allocation13 + $0x5]] %s1933_s24  ;;  %v1564_v53 = vstv %s1933_s24 }
0x231c   :  { %vm1565_vm6 = vcmp.eq.s32.totalorder %v2460_v10, %v1564_v53 }
0x231d   :  { %v1566_v56 = vsel %vm1565_vm6, %v1563_v55, 7 }
0x231e   :  { %v1567_v57 = vsel %vm1236_vm7, %v1566_v56, 2147483647  ;;  %v1656_v56 = vld [vmem:[#allocation5 + $0x2] sm:$0x1] }
0x231f   :  { %v1569_v58 = vshra.s32 %v1567_v57, 16  ;;  %v1568_v60 = vand.u32 65535, %v1567_v57 }
0x2321   :  { %v1571_v59 = vcvt.s32.f32 %v1569_v58  ;;  %v1570_v5 = vcvt.s32.f32 %v1568_v60 }
0x2323   :  { %1572 = vmin.xlane.f32.xlu0 %v1571_v59 }
0x23b0   :  { %v1573_v61 = vpop.xlane.xlu0 %1572 }
0x23b1   :  { %vm1574_vm10 = vcmp.eq.f32.partialorder %v1571_v59, %v1573_v61  ;;  %v1579_v63 = vcvt.f32.s32 %v1573_v61 }
0x23b2   :  { %v1575_v62 = vsel %vm1574_vm10, %v1570_v5, inf }
0x23b3   :  { %1576 = vmin.xlane.f32.xlu1 %v1575_v62  ;;  %v1580_v3 = vshll.u32 %v1579_v63, 16 }
0x2440   :  { %v1577_v2 = vpop.xlane.xlu1 %1576 }
0x2441   :  { %v1578_v4 = vcvt.f32.s32 %v1577_v2 }
0x2443   :  { %v1581_v8 = vadd.s32 %v1580_v3, %v1578_v4 }
0x2445   :  { %v1582_v6 = vrot.slane %v1581_v8, 4 }
0x2447   :  { %vm1583_vm11 = vcmp.lt.s32.totalorder %v1581_v8, %v1582_v6 }
0x2448   :  { %v1584_v7 = vsel %vm1583_vm11, %v1581_v8, %v1582_v6 }
0x2449   :  { %v1585_v22 = vrot.slane %v1584_v7, 2 }
0x244b   :  { %vm1586_vm12 = vcmp.lt.s32.totalorder %v1584_v7, %v1585_v22 }
0x244c   :  { %v1587_v0 = vsel %vm1586_vm12, %v1584_v7, %v1585_v22 }
0x244d   :  { %v1588_v9 = vrot.slane %v1587_v0, 1 }
0x244f   :  { %vm1589_vm13 = vcmp.lt.s32.totalorder %v1587_v0, %v1588_v9 }
0x2450   :  { %v1590_v11 = vsel %vm1589_vm13, %v1587_v0, %v1588_v9 }
0x2451   :  { %1934 = vpush %v1590_v11 }
0x2482   :  { %s1935_s14 = spop %1934 }
0x2483   :  { %1593 = sst [smem:[#allocation13 + $0x4]] %s1935_s14  ;;  %v1595_v12 = vstv %s1935_s14 }
0x2484   :  { %vm1596_vm14 = vcmp.eq.s32.totalorder %v2460_v10, %v1595_v12 }
0x2485   :  { %v1597_v14 = vsel %vm1596_vm14, %v1594_v13, 7 }
0x2486   :  { %v1598_v15 = vsel %vm1236_vm7, %v1597_v14, 2147483647  ;;  %v1687_v14 = vld [vmem:[#allocation5 + $0x1] sm:$0x1] }
0x2487   :  { %v1600_v16 = vshra.s32 %v1598_v15, 16  ;;  %v1599_v18 = vand.u32 65535, %v1598_v15 }
0x2489   :  { %v1602_v17 = vcvt.s32.f32 %v1600_v16  ;;  %v1601_v20 = vcvt.s32.f32 %v1599_v18 }
0x248b   :  { %1603 = vmin.xlane.f32.xlu0 %v1602_v17 }
0x2518   :  { %v1604_v19 = vpop.xlane.xlu0 %1603 }
0x2519   :  { %vm1605_vm15 = vcmp.eq.f32.partialorder %v1602_v17, %v1604_v19  ;;  %v1610_v23 = vcvt.f32.s32 %v1604_v19 }
0x251a   :  { %v1606_v21 = vsel %vm1605_vm15, %v1601_v20, inf }
0x251b   :  { %1607 = vmin.xlane.f32.xlu1 %v1606_v21  ;;  %v1611_v26 = vshll.u32 %v1610_v23, 16 }
0x25a8   :  { %v1608_v25 = vpop.xlane.xlu1 %1607 }
0x25a9   :  { %v1609_v27 = vcvt.f32.s32 %v1608_v25 }
0x25ab   :  { %v1612_v28 = vadd.s32 %v1611_v26, %v1609_v27 }
0x25ad   :  { %v1613_v29 = vrot.slane %v1612_v28, 4 }
0x25af   :  { %vm1614_vm0 = vcmp.lt.s32.totalorder %v1612_v28, %v1613_v29 }
0x25b0   :  { %v1615_v30 = vsel %vm1614_vm0, %v1612_v28, %v1613_v29  ;;  %vm1470_vm0 = vcmask 0  }
0x25b1   :  { %v1616_v31 = vrot.slane %v1615_v30, 2 }
0x25b3   :  { %vm1617_vm1 = vcmp.lt.s32.totalorder %v1615_v30, %v1616_v31 }
0x25b4   :  { %v1618_v32 = vsel %vm1617_vm1, %v1615_v30, %v1616_v31 }
0x25b5   :  { %v1619_v33 = vrot.slane %v1618_v32, 1 }
0x25b7   :  { %vm1620_vm2 = vcmp.lt.s32.totalorder %v1618_v32, %v1619_v33 }
0x25b8   :  { %v1621_v34 = vsel %vm1620_vm2, %v1618_v32, %v1619_v33 }
0x25b9   :  { %1936 = vpush %v1621_v34 }
0x25ea   :  { %s1937_s15 = spop %1936 }
0x25eb   :  { %1624 = sst [smem:[#allocation13 + $0x3]] %s1937_s15  ;;  %v1626_v35 = vstv %s1937_s15 }
0x25ec   :  { %vm1627_vm3 = vcmp.eq.s32.totalorder %v2460_v10, %v1626_v35 }
0x25ed   :  { %v1628_v37 = vsel %vm1627_vm3, %v1625_v36, 7 }
0x25ee   :  { %v1629_v38 = vsel %vm1236_vm7, %v1628_v37, 2147483647 }
0x25ef   :  { %v1631_v39 = vshra.s32 %v1629_v38, 16  ;;  %v1630_v41 = vand.u32 65535, %v1629_v38 }
0x25f1   :  { %v1633_v40 = vcvt.s32.f32 %v1631_v39  ;;  %v1632_v43 = vcvt.s32.f32 %v1630_v41 }
0x25f3   :  { %1634 = vmin.xlane.f32.xlu0 %v1633_v40 }
0x2680   :  { %v1635_v42 = vpop.xlane.xlu0 %1634 }
0x2681   :  { %vm1636_vm4 = vcmp.eq.f32.partialorder %v1633_v40, %v1635_v42  ;;  %v1641_v45 = vcvt.f32.s32 %v1635_v42 }
0x2682   :  { %v1637_v44 = vsel %vm1636_vm4, %v1632_v43, inf }
0x2683   :  { %1638 = vmin.xlane.f32.xlu1 %v1637_v44  ;;  %v1642_v47 = vshll.u32 %v1641_v45, 16 }
0x2710   :  { %v1639_v46 = vpop.xlane.xlu1 %1638 }
0x2711   :  { %v1640_v48 = vcvt.f32.s32 %v1639_v46 }
0x2713   :  { %v1643_v49 = vadd.s32 %v1642_v47, %v1640_v48 }
0x2715   :  { %v1644_v1 = vrot.slane %v1643_v49, 4 }
0x2717   :  { %vm1645_vm5 = vcmp.lt.s32.totalorder %v1643_v49, %v1644_v1 }
0x2718   :  { %v1646_v50 = vsel %vm1645_vm5, %v1643_v49, %v1644_v1 }
0x2719   :  { %v1647_v51 = vrot.slane %v1646_v50, 2 }
0x271b   :  { %vm1648_vm8 = vcmp.lt.s32.totalorder %v1646_v50, %v1647_v51 }
0x271c   :  { %v1649_v24 = vsel %vm1648_vm8, %v1646_v50, %v1647_v51 }
0x271d   :  { %v1650_v52 = vrot.slane %v1649_v24, 1 }
0x271f   :  { %vm1651_vm9 = vcmp.lt.s32.totalorder %v1649_v24, %v1650_v52 }
0x2720   :  { %v1652_v53 = vsel %vm1651_vm9, %v1649_v24, %v1650_v52 }
0x2721   :  { %1938 = vpush %v1652_v53 }
0x2752   :  { %s1939_s16 = spop %1938 }
0x2753   :  { %1655 = sst [smem:[#allocation13 + $0x2]] %s1939_s16  ;;  %v1657_v55 = vstv %s1939_s16 }
0x2754   :  { %vm1658_vm6 = vcmp.eq.s32.totalorder %v2460_v10, %v1657_v55 }
0x2755   :  { %v1659_v57 = vsel %vm1658_vm6, %v1656_v56, 7 }
0x2756   :  { %v1660_v58 = vsel %vm1236_vm7, %v1659_v57, 2147483647 }
0x2757   :  { %v1662_v59 = vshra.s32 %v1660_v58, 16  ;;  %v1661_v61 = vand.u32 65535, %v1660_v58 }
0x2759   :  { %v1664_v60 = vcvt.s32.f32 %v1662_v59  ;;  %v1663_v62 = vcvt.s32.f32 %v1661_v61 }
0x275b   :  { %1665 = vmin.xlane.f32.xlu0 %v1664_v60 }
0x27e8   :  { %v1666_v5 = vpop.xlane.xlu0 %1665 }
0x27e9   :  { %vm1667_vm10 = vcmp.eq.f32.partialorder %v1664_v60, %v1666_v5  ;;  %v1672_v2 = vcvt.f32.s32 %v1666_v5 }
0x27ea   :  { %v1668_v63 = vsel %vm1667_vm10, %v1663_v62, inf }
0x27eb   :  { %1669 = vmin.xlane.f32.xlu1 %v1668_v63  ;;  %v1673_v4 = vshll.u32 %v1672_v2, 16 }
0x2878   :  { %v1670_v3 = vpop.xlane.xlu1 %1669 }
0x2879   :  { %v1671_v8 = vcvt.f32.s32 %v1670_v3 }
0x287b   :  { %v1674_v6 = vadd.s32 %v1673_v4, %v1671_v8 }
0x287d   :  { %v1675_v7 = vrot.slane %v1674_v6, 4 }
0x287f   :  { %vm1676_vm11 = vcmp.lt.s32.totalorder %v1674_v6, %v1675_v7 }
0x2880   :  { %v1677_v22 = vsel %vm1676_vm11, %v1674_v6, %v1675_v7 }
0x2881   :  { %v1678_v0 = vrot.slane %v1677_v22, 2 }
0x2883   :  { %vm1679_vm12 = vcmp.lt.s32.totalorder %v1677_v22, %v1678_v0 }
0x2884   :  { %v1680_v9 = vsel %vm1679_vm12, %v1677_v22, %v1678_v0 }
0x2885   :  { %v1681_v11 = vrot.slane %v1680_v9, 1 }
0x2887   :  { %vm1682_vm13 = vcmp.lt.s32.totalorder %v1680_v9, %v1681_v11 }
0x2888   :  { %v1683_v12 = vsel %vm1682_vm13, %v1680_v9, %v1681_v11 }
0x2889   :  { %1940 = vpush %v1683_v12 }
0x28ba   :  { %s1941_s17 = spop %1940 }
0x28bb   :  { %1686 = sst [smem:[#allocation13 + $0x1]] %s1941_s17  ;;  %v1688_v13 = vstv %s1941_s17 }
0x28bc   :  { %vm1689_vm14 = vcmp.eq.s32.totalorder %v2460_v10, %v1688_v13 }
0x28bd   :  { %v1690_v15 = vsel %vm1689_vm14, %v1687_v14, 7 }
0x28be   :  { %v1691_v16 = vsel %vm1236_vm7, %v1690_v15, 2147483647 }
0x28bf   :  { %v1693_v17 = vshra.s32 %v1691_v16, 16  ;;  %v1692_v19 = vand.u32 65535, %v1691_v16 }
0x28c1   :  { %v1695_v18 = vcvt.s32.f32 %v1693_v17  ;;  %v1694_v21 = vcvt.s32.f32 %v1692_v19 }
0x28c3   :  { %1696 = vmin.xlane.f32.xlu0 %v1695_v18 }
0x28d9   :  { %1467 = vrot.lane.b32.xlu0 %v2455_v54, %s2142_s1 }
0x2950   :  { %v1697_v20 = vpop.xlane.xlu0 %1696 }
0x2951   :  { %vm1698_vm15 = vcmp.eq.f32.partialorder %v1695_v18, %v1697_v20 }
0x2952   :  { %v1699_v23 = vsel %vm1698_vm15, %v1694_v21, inf }
0x2953   :  { %1700 = vmin.xlane.f32.xlu1 %v1699_v23 }
0x2954   :  { %v1468_v25 = vpop.permute.xlu0 %1467 }
0x2955   :  { %1471 = vst.msk [vmem:[#allocation12] sm:$0x1] %vm1470_vm0, %v1468_v25 }
0x2956   :  { %2078 = shalt.err (!%p2075_p6)
}
0x2957   :  { %s2079_s25 = scalar_lea.hbm %s2523_s10, 16 }
0x2958   :  { %p2080_p7 = scmp.ne.s32.totalorder %s2523_s10, %s2079_s25  ;;  %p2083_p8 = scmp.lt.u32.totalorder %s2079_s25, %s2523_s10 }
0x295a   :  { %p2085_p9 = pnand %p2083_p8, %p2080_p7 }
0x295c   :  { %2088 = shalt.err (!%p2085_p9)
}
0x295d   :  { %1727 = dma.vmem_to_hbm [thread:$0]  %s1725_s19, 16, %s2523_s10, [#allocation8]  }
0x295e   :  { %s2089_s30 = scalar_lea.vmem %s1743_s0, 128  ;;  %p2094_p11 = scmp.lt.s32.totalorder %s1743_s0, %s1743_s0 }
0x295f   :  { %p2090_p10 = scmp.ne.s32.totalorder %s1743_s0, %s2089_s30  ;;  %p2095_p12 = scmp.lt.s32.totalorder %s2089_s30, %s2089_s30 }
0x2961   :  { %p2096_p13 = por %p2095_p12, %p2094_p11 }
0x2963   :  { %p2097_p0 = pnand %p2096_p13, %p2090_p10 }
0x2965   :  { %2100 = shalt.err (!%p2097_p0)
}
0x2966   :  { %s2101_s13 = scalar_lea.hbm %s2525_s12, 128 }
0x2967   :  { %p2102_p1 = scmp.ne.s32.totalorder %s2525_s12, %s2101_s13  ;;  %p2105_p2 = scmp.lt.u32.totalorder %s2101_s13, %s2525_s12 }
0x2969   :  { %p2107_p3 = pnand %p2105_p2, %p2102_p1 }
0x296b   :  { %2110 = shalt.err (!%p2107_p3)
}
0x296c   :  { %1745 = dma.vmem_to_hbm [thread:$0]  %s1743_s0, 128, %s2525_s12, [#allocation15]   ;;  %v1703_v54 = vcvt.f32.s32 %v1697_v20 }
0x296d   :  { %s2111_s12 = scalar_lea.hbm %s2524_s11, 16 }
0x296e   :  { %v1704_v26 = vshll.u32 %v1703_v54, 16  ;;  %p2112_p4 = scmp.ne.s32.totalorder %s2524_s11, %s2111_s12  ;;  %p2115_p5 = scmp.lt.u32.totalorder %s2111_s12, %s2524_s11 }
0x2970   :  { %p2117_p6 = pnand %p2115_p5, %p2112_p4 }
0x29e0   :  { %v1701_v10 = vpop.xlane.xlu1 %1700 }
0x29e1   :  { %v1702_v27 = vcvt.f32.s32 %v1701_v10 }
0x29e3   :  { %v1705_v28 = vadd.s32 %v1704_v26, %v1702_v27 }
0x29e5   :  { %v1706_v29 = vrot.slane %v1705_v28, 4 }
0x29e7   :  { %vm1707_vm7 = vcmp.lt.s32.totalorder %v1705_v28, %v1706_v29 }
0x29e8   :  { %v1708_v30 = vsel %vm1707_vm7, %v1705_v28, %v1706_v29 }
0x29e9   :  { %v1709_v31 = vrot.slane %v1708_v30, 2 }
0x29eb   :  { %vm1710_vm1 = vcmp.lt.s32.totalorder %v1708_v30, %v1709_v31 }
0x29ec   :  { %v1711_v32 = vsel %vm1710_vm1, %v1708_v30, %v1709_v31 }
0x29ed   :  { %v1712_v33 = vrot.slane %v1711_v32, 1 }
0x29ef   :  { %vm1713_vm2 = vcmp.lt.s32.totalorder %v1711_v32, %v1712_v33 }
0x29f0   :  { %v1714_v34 = vsel %vm1713_vm2, %v1711_v32, %v1712_v33 }
0x29f1   :  { %1942 = vpush %v1714_v34 }
0x2a22   :  { %s1943_s15 = spop %1942 }
0x2a23   :  { %1717 = sst [smem:[#allocation13]] %s1943_s15 }
0x2a24   :  { %2120 = shalt.err (!%p2117_p6)
}
0x2a25   :  { %s2145_s0 = smov [#allocation13]  }
0x2a26   :  { %1735 = dma.smem_to_hbm %s2145_s0, 16, %s2524_s11, [#allocation9]  }
0x2a27   :  { %2125 = dma.done.wait [#allocation8], 16  }
0x2a28   :  { %2126 = vsyncadd [#allocation8], 4294967280 }
0x2a29   :  { %2127 = dma.done.wait [#allocation9], 16  }
0x2a2a   :  { %2128 = vsyncadd [#allocation9], 4294967280 }
0x2a2b   :  { %2129 = dma.done.wait [#allocation15], 128  }
0x2a2c   :  { %2130 = vsyncadd [#allocation15], 4294967168 }
0x2a2d   :  { %1755 = sfence }
0x2a2e   :  { %1756 = vsyncpa [#allocation7], 1 }
0x2a2f   :  { %1757 = vsyncpa [#allocation11], 1 }
0x2a30   :  { %1758 = vsyncpa [#allocation8], 1 }
0x2a31   :  { %1759 = vsyncpa [#allocation15], 1 }
0x2a32   :  { %1760 = vsyncpa [#allocation9], 1 }

</bundles_post_ra>
